<compile_context>
chip_gen: v5e
topology: v5e:2x2
jax: 0.10.0
libtpu: 0.0.40
codegen_flags: <defaults>
</compile_context>

<pallas_src>
import numpy as np
import jax
import jax.numpy as jnp
from jax.experimental import pallas as pl
from jax.experimental.pallas import tpu as pltpu


# ---------------------------------------------------------------------------
# Fused kernel: stacked 1x1 conv (W_all @ X) + per-head masked softmax over the
# sublane axis + one resize/pad matmul against the precomputed operator + border.
# ---------------------------------------------------------------------------
def _make_fpn_head_kernel(num_heads, k_out, k_pad):
    def kernel(x_ref, w_ref, m_ref, c_ref, o_ref):
        # x_ref: [C, HW]   w_ref: [NH*K_pad, C]
        # m_ref: [HW, OUT] c_ref: [1, OUT]      o_ref: [NH, K, OUT]
        x = x_ref[...]
        w = w_ref[...]
        hw = x.shape[1]

        # One conv matmul for all heads (padded weight rows are zero).
        logits = jnp.dot(w, x, preferred_element_type=jnp.float32)  # [NH*K_pad, HW]

        # Rows >= K within each K_pad group are padding: mask them to -1e30 so
        # exp underflows to exactly 0 and they drop out of the softmax sum.
        row_ids = jax.lax.broadcasted_iota(jnp.int32, (k_pad, hw), 0)
        valid = row_ids < k_out
        neg = jnp.float32(-1e30)

        probs_parts = []
        for h in range(num_heads):                       # static, small
            lg = logits[h * k_pad:(h + 1) * k_pad, :]    # sublane-aligned slice
            lg = jnp.where(valid, lg, neg)
            mx = jnp.max(lg, axis=0, keepdims=True)
            e = jnp.exp(lg - mx)                         # padded rows -> 0.0
            inv = pl.reciprocal(jnp.sum(e, axis=0, keepdims=True))  # 1 recip / column
            probs_parts.append(e * inv)
        probs = jnp.concatenate(probs_parts, axis=0)     # [NH*K_pad, HW]

        # One resize (or pad-scatter) matmul for all heads; border term added once.
        resized = jnp.dot(probs, m_ref[...], preferred_element_type=jnp.float32)
        resized = resized + c_ref[...]                   # [NH*K_pad, OUT]

        for h in range(num_heads):                       # write only the K real rows
            o_ref[h] = resized[h * k_pad:h * k_pad + k_out, :]

    return kernel


def fpn_head_forward(x_flat, w_all, m_op, c_border, *, num_heads, k_out, k_pad):
    """x_flat: [N,C,HW], w_all: [NH*K_pad,C], m_op: [HW,OUT], c_border: [1,OUT]
       -> [NH, N, K, OUT] (f32, lane-dense)."""
    N, C, HW = x_flat.shape
    OUT = m_op.shape[1]
    kernel = _make_fpn_head_kernel(num_heads, k_out, k_pad)
    return pl.pallas_call(
        kernel,
        out_shape=jax.ShapeDtypeStruct((num_heads, N, k_out, OUT), jnp.float32),
        grid_spec=pltpu.PrefetchScalarGridSpec(
            num_scalar_prefetch=0,
            grid=(N,),                                    # heads collapsed into matmuls
            in_specs=[
                pl.BlockSpec((None, C, HW), lambda n: (n, 0, 0)),          # x (squeezed)
                pl.BlockSpec((num_heads * k_pad, C), lambda n: (0, 0)),    # stacked W
                pl.BlockSpec((HW, OUT), lambda n: (0, 0)),                 # resize op
                pl.BlockSpec((1, OUT), lambda n: (0, 0)),                  # border const
            ],
            out_specs=pl.BlockSpec((num_heads, None, k_out, OUT),
                                   lambda n: (0, n, 0, 0)),
        ),
        compiler_params=pltpu.CompilerParams(dimension_semantics=("parallel",)),
    )(x_flat, w_all, m_op, c_border)


# ---------------------------------------------------------------------------
# Interpolation matrix matching torch F.interpolate(mode='bilinear',
# align_corners=False) along one axis.  Built in numpy (host-side constants).
# ---------------------------------------------------------------------------
def _interp_matrix_np(out_size, in_size):
    scale = in_size / out_size
    i = np.arange(out_size, dtype=np.float32)
    src = (i + 0.5) * scale - 0.5
    src = np.maximum(src, 0.0)                   # PyTorch clamps negative src to 0
    i0 = np.minimum(np.floor(src).astype(np.int64), in_size - 1)
    i1 = np.minimum(i0 + 1, in_size - 1)
    w1 = (src - i0).astype(np.float32)
    w0 = 1.0 - w1
    a = np.zeros((out_size, in_size), np.float32)
    rows = np.arange(out_size)
    a[rows, i0] += w0
    a[rows, i1] += w1
    return a


# ---------------------------------------------------------------------------
# FPNHead module (synthetic deterministic parameters)
# ---------------------------------------------------------------------------
class FPNHeadPallas:
    def __init__(self, backbone, output_k, num_sub_heads, input_sz, key):
        num_features = 128 if backbone == "resnet18" else 256
        self.num_features = num_features
        self.output_k = output_k
        self.num_sub_heads = num_sub_heads
        self.input_sz = input_sz
        self.k_pad = -(-output_k // 8) * 8               # pad K to a multiple of 8

        keys = jax.random.split(key, num_sub_heads)
        scale = 1.0 / (num_features ** 0.5)
        # Conv2d weights [K, C, 1, 1] (no bias) -> stored as [K, C].
        self.weights = [
            jax.random.normal(k, (output_k, num_features), jnp.float32) * scale
            for k in keys
        ]
        # Stacked, sublane-padded weights: [NH*K_pad, C] (padded rows are zero).
        w_pad = jnp.zeros((num_sub_heads, self.k_pad, num_features), jnp.float32)
        w_pad = w_pad.at[:, :output_k, :].set(jnp.stack(self.weights))
        self.w_all = w_pad.reshape(num_sub_heads * self.k_pad, num_features)

        self._op_cache = {}                              # (H, W) -> (m_op, c, out_hw)

    def _operators(self, H, W):
        """Precomputed (cached) resize / pad operator and border constant."""
        cache_key = (H, W)
        if cache_key not in self._op_cache:
            Hp, Wp = H + 2, W + 2
            K = self.output_k
            S = self.input_sz
            if Wp != S:
                # Bilinear resize of the interior pixels as one operator:
                #   m[h*W + w, s*S + t] = Ah[s, h+1] * Aw[t, w+1]
                ah = _interp_matrix_np(S, Hp)            # [S, Hp]
                aw = _interp_matrix_np(S, Wp)            # [S, Wp]
                m = np.einsum("sh,tw->hwst", ah[:, 1:Hp - 1], aw[:, 1:Wp - 1])
                m = m.reshape(H * W, S * S)
                # Constant contribution of the zero-pad ring (softmax there == 1/K).
                border = np.ones((Hp, Wp), np.float32)
                border[1:Hp - 1, 1:Wp - 1] = 0.0
                c = (1.0 / K) * np.einsum("sh,hw,tw->st", ah, border, aw)
                c = c.reshape(1, S * S)
                out_hw = (S, S)
            else:
                # No resize: scatter interior pixels into the padded frame; the pad
                # ring gets the exact conv/softmax value 1/K (no post-kernel jnp.pad).
                m = np.zeros((H * W, Hp * Wp), np.float32)
                rows = np.arange(H * W)
                hh, ww = rows // W, rows % W
                m[rows, (hh + 1) * Wp + (ww + 1)] = 1.0
                ring = np.ones((Hp, Wp), np.float32)
                ring[1:Hp - 1, 1:Wp - 1] = 0.0
                c = (1.0 / K) * ring.reshape(1, Hp * Wp)
                out_hw = (Hp, Wp)
            self._op_cache[cache_key] = (jnp.asarray(m, jnp.float32),
                                         jnp.asarray(c, jnp.float32),
                                         out_hw)
        return self._op_cache[cache_key]

    def __call__(self, x):
        # x: NCHW [N, C, H, W], float32
        N, C, H, W = x.shape
        assert C == self.num_features
        m_op, c_border, (oh, ow) = self._operators(H, W)
        x_flat = x.reshape(N, C, H * W)                  # free view of NCHW
        out = fpn_head_forward(
            x_flat, self.w_all, m_op, c_border,
            num_heads=self.num_sub_heads, k_out=self.output_k, k_pad=self.k_pad)
        out = out.reshape(self.num_sub_heads, N, self.output_k, oh, ow)  # free view
        return [out[i] for i in range(self.num_sub_heads)]


# ---------------------------------------------------------------------------
# Pure-JAX reference (same math) for a correctness sanity check.
# ---------------------------------------------------------------------------
def _reference(x, weights, input_sz):
    N, C, H, W = x.shape
    xp = jnp.pad(x, ((0, 0), (0, 0), (1, 1), (1, 1)))
    Hp, Wp = H + 2, W + 2
    outs = []
    for w in weights:
        logits = jnp.einsum("nchw,kc->nkhw", xp, w)
        probs = jax.nn.softmax(logits, axis=1)
        if Wp != input_sz:
            ah = jnp.asarray(_interp_matrix_np(input_sz, Hp))
            aw = jnp.asarray(_interp_matrix_np(input_sz, Wp))
            probs = jnp.einsum("sh,nkhw,tw->nkst", ah, probs, aw)
        outs.append(probs)
    return outs


if __name__ == "__main__":
    # Small config consistent with the module (resnet18 backbone -> 128 features).
    backbone = "resnet18"
    output_k = 10
    num_sub_heads = 2
    input_sz = 32
    N, C, H, W = 2, 128, 16, 16

    key = jax.random.PRNGKey(0)
    k_x, k_p = jax.random.split(key)
    x = jax.random.normal(k_x, (N, C, H, W), jnp.float32)

    # --- Resize path (Wp = 18 != input_sz = 32 -> bilinear upsample) -----------
    head = FPNHeadPallas(backbone, output_k, num_sub_heads, input_sz, k_p)
    outs = head(x)
    for o in outs:
        jax.block_until_ready(o)
    assert len(outs) == num_sub_heads
    assert all(o.shape == (N, output_k, input_sz, input_sz) for o in outs)
    assert all(o.dtype == jnp.float32 for o in outs)
    refs = _reference(x, head.weights, input_sz)
    for o, r in zip(outs, refs):
        assert jnp.allclose(o, r, atol=1e-4, rtol=1e-4), float(jnp.max(jnp.abs(o - r)))

    # --- No-resize path (Wp == input_sz == 18): border emitted by the kernel ---
    head2 = FPNHeadPallas(backbone, output_k, num_sub_heads, W + 2, k_p)
    outs2 = head2(x)
    for o in outs2:
        jax.block_until_ready(o)
    assert all(o.shape == (N, output_k, H + 2, W + 2) for o in outs2)
    refs2 = _reference(x, head2.weights, W + 2)
    for o, r in zip(outs2, refs2):
        assert jnp.allclose(o, r, atol=1e-4, rtol=1e-4), float(jnp.max(jnp.abs(o - r)))

    print("KERNEL_OK")
</pallas_src>

<mosaic_0001>
module attributes {stable_mosaic.version = 11 : i64} {
  func.func @kernel(%arg0: i32, %arg1: memref<1x128x256xf32, #tpu.memory_space<vmem>>, %arg2: memref<32x128xf32, #tpu.memory_space<vmem>>, %arg3: memref<256x1024xf32, #tpu.memory_space<vmem>>, %arg4: memref<1x1024xf32, #tpu.memory_space<vmem>>, %arg5: memref<2x1x10x1024xf32, #tpu.memory_space<vmem>>) attributes {dimension_semantics = [#tpu.dimension_semantics<parallel>], iteration_bounds = array<i64: 2>, scalar_prefetch = 0 : i64, scratch_operands = 0 : i64, tpu.core_type = #tpu.core_type<tc>, window_params = [{transform_indices = @transform_0, window_bounds = array<i64: 1, 128, 256>}, {pipeline_mode = #tpu.pipeline_mode<synchronous>, transform_indices = @transform_1, window_bounds = array<i64: 32, 128>}, {pipeline_mode = #tpu.pipeline_mode<synchronous>, transform_indices = @transform_2, window_bounds = array<i64: 256, 1024>}, {pipeline_mode = #tpu.pipeline_mode<synchronous>, transform_indices = @transform_3, window_bounds = array<i64: 1, 1024>}, {transform_indices = @transform_4, window_bounds = array<i64: 2, 1, 10, 1024>}]} {
    %c0 = arith.constant 0 : index
    %c0_0 = arith.constant 0 : index
    %c0_1 = arith.constant 0 : index
    %0 = vector.load %arg1[%c0, %c0_0, %c0_1] : memref<1x128x256xf32, #tpu.memory_space<vmem>>, vector<1x128x256xf32>
    %1 = vector.shape_cast %0 : vector<1x128x256xf32> to vector<128x256xf32>
    %c0_2 = arith.constant 0 : index
    %c0_3 = arith.constant 0 : index
    %2 = vector.load %arg2[%c0_2, %c0_3] : memref<32x128xf32, #tpu.memory_space<vmem>>, vector<32x128xf32>
    %cst = arith.constant dense<0.000000e+00> : vector<32x256xf32>
    %3 = tpu.matmul %2, %1, %cst {dimension_numbers = #tpu.dot_dimension_numbers<[1], [0], [0], [1], [0, 0, 1, 1], [], []>} : vector<32x128xf32>, vector<128x256xf32>, vector<32x256xf32> -> vector<32x256xf32>
    %4 = tpu.iota {dimensions = array<i32: 0>} : vector<16x256xi32>
    %c10_i32 = arith.constant 10 : i32
    %5 = vector.broadcast %c10_i32 : i32 to vector<16x256xi32>
    %6 = arith.cmpi slt, %4, %5 : vector<16x256xi32>
    %7 = vector.extract_strided_slice %3 {offsets = [0, 0], sizes = [16, 256], strides = [1, 1]} : vector<32x256xf32> to vector<16x256xf32>
    %cst_4 = arith.constant -1.000000e+30 : f32
    %8 = vector.broadcast %cst_4 : f32 to vector<16x256xf32>
    %9 = arith.select %6, %7, %8 : vector<16x256xi1>, vector<16x256xf32>
    %cst_5 = arith.constant dense<0xFF800000> : vector<256xf32>
    %10 = vector.multi_reduction <maximumf>, %9, %cst_5 [0] : vector<16x256xf32> to vector<256xf32>
    %11 = vector.shape_cast %10 : vector<256xf32> to vector<1x256xf32>
    %12 = vector.broadcast %11 : vector<1x256xf32> to vector<16x256xf32>
    %13 = arith.subf %9, %12 : vector<16x256xf32>
    %14 = math.exp %13 : vector<16x256xf32>
    %cst_6 = arith.constant dense<0.000000e+00> : vector<256xf32>
    %15 = vector.multi_reduction <add>, %14, %cst_6 [0] : vector<16x256xf32> to vector<256xf32>
    %16 = vector.shape_cast %15 : vector<256xf32> to vector<1x256xf32>
    %17 = tpu.reciprocal %16 : vector<1x256xf32> -> vector<1x256xf32>
    %18 = vector.broadcast %17 : vector<1x256xf32> to vector<16x256xf32>
    %19 = arith.mulf %14, %18 : vector<16x256xf32>
    %20 = vector.extract_strided_slice %3 {offsets = [16, 0], sizes = [16, 256], strides = [1, 1]} : vector<32x256xf32> to vector<16x256xf32>
    %cst_7 = arith.constant -1.000000e+30 : f32
    %21 = vector.broadcast %cst_7 : f32 to vector<16x256xf32>
    %22 = arith.select %6, %20, %21 : vector<16x256xi1>, vector<16x256xf32>
    %cst_8 = arith.constant dense<0xFF800000> : vector<256xf32>
    %23 = vector.multi_reduction <maximumf>, %22, %cst_8 [0] : vector<16x256xf32> to vector<256xf32>
    %24 = vector.shape_cast %23 : vector<256xf32> to vector<1x256xf32>
    %25 = vector.broadcast %24 : vector<1x256xf32> to vector<16x256xf32>
    %26 = arith.subf %22, %25 : vector<16x256xf32>
    %27 = math.exp %26 : vector<16x256xf32>
    %cst_9 = arith.constant dense<0.000000e+00> : vector<256xf32>
    %28 = vector.multi_reduction <add>, %27, %cst_9 [0] : vector<16x256xf32> to vector<256xf32>
    %29 = vector.shape_cast %28 : vector<256xf32> to vector<1x256xf32>
    %30 = tpu.reciprocal %29 : vector<1x256xf32> -> vector<1x256xf32>
    %31 = vector.broadcast %30 : vector<1x256xf32> to vector<16x256xf32>
    %32 = arith.mulf %27, %31 : vector<16x256xf32>
    %33 = tpu.concatenate %19, %32 in 0 : vector<16x256xf32>, vector<16x256xf32> -> vector<32x256xf32>
    %c0_10 = arith.constant 0 : index
    %c0_11 = arith.constant 0 : index
    %34 = vector.load %arg3[%c0_10, %c0_11] : memref<256x1024xf32, #tpu.memory_space<vmem>>, vector<256x1024xf32>
    %cst_12 = arith.constant dense<0.000000e+00> : vector<32x1024xf32>
    %35 = tpu.matmul %33, %34, %cst_12 {dimension_numbers = #tpu.dot_dimension_numbers<[1], [0], [0], [1], [0, 0, 1, 1], [], []>} : vector<32x256xf32>, vector<256x1024xf32>, vector<32x1024xf32> -> vector<32x1024xf32>
    %c0_13 = arith.constant 0 : index
    %c0_14 = arith.constant 0 : index
    %36 = vector.load %arg4[%c0_13, %c0_14] : memref<1x1024xf32, #tpu.memory_space<vmem>>, vector<1x1024xf32>
    %37 = vector.broadcast %36 : vector<1x1024xf32> to vector<32x1024xf32>
    %38 = arith.addf %35, %37 : vector<32x1024xf32>
    %39 = vector.extract_strided_slice %38 {offsets = [0, 0], sizes = [10, 1024], strides = [1, 1]} : vector<32x1024xf32> to vector<10x1024xf32>
    %c0_15 = arith.constant 0 : index
    %c0_16 = arith.constant 0 : index
    %c0_17 = arith.constant 0 : index
    %c0_18 = arith.constant 0 : index
    %40 = vector.load %arg5[%c0_15, %c0_16, %c0_17, %c0_18] : memref<2x1x10x1024xf32, #tpu.memory_space<vmem>>, vector<1x1x10x1024xf32>
    %41 = vector.shape_cast %40 : vector<1x1x10x1024xf32> to vector<10x1024xf32>
    %42 = vector.shape_cast %39 : vector<10x1024xf32> to vector<1x1x10x1024xf32>
    tpu.vector_store %arg5[%c0_15, %c0_16, %c0_17, %c0_18], %42 {strides = array<i32>} : memref<2x1x10x1024xf32, #tpu.memory_space<vmem>>, vector<1x1x10x1024xf32>,
    %43 = vector.extract_strided_slice %38 {offsets = [16, 0], sizes = [10, 1024], strides = [1, 1]} : vector<32x1024xf32> to vector<10x1024xf32>
    %c1 = arith.constant 1 : index
    %c0_19 = arith.constant 0 : index
    %c0_20 = arith.constant 0 : index
    %c0_21 = arith.constant 0 : index
    %44 = vector.load %arg5[%c1, %c0_19, %c0_20, %c0_21] : memref<2x1x10x1024xf32, #tpu.memory_space<vmem>>, vector<1x1x10x1024xf32>
    %45 = vector.shape_cast %44 : vector<1x1x10x1024xf32> to vector<10x1024xf32>
    %46 = vector.shape_cast %43 : vector<10x1024xf32> to vector<1x1x10x1024xf32>
    tpu.vector_store %arg5[%c1, %c0_19, %c0_20, %c0_21], %46 {strides = array<i32>} : memref<2x1x10x1024xf32, #tpu.memory_space<vmem>>, vector<1x1x10x1024xf32>,
    return
  }
  func.func @transform_0(%arg0: i32) -> (i32, i32, i32) {
    %c0_i32 = arith.constant 0 : i32
    %c0_i32_0 = arith.constant 0 : i32
    %c0_i32_1 = arith.constant 0 : i32
    return %arg0, %c0_i32, %c0_i32_0 : i32, i32, i32
  }
  func.func @transform_1(%arg0: i32) -> (i32, i32) {
    %c0_i32 = arith.constant 0 : i32
    %c0_i32_0 = arith.constant 0 : i32
    %c0_i32_1 = arith.constant 0 : i32
    return %c0_i32, %c0_i32_0 : i32, i32
  }
  func.func @transform_2(%arg0: i32) -> (i32, i32) {
    %c0_i32 = arith.constant 0 : i32
    %c0_i32_0 = arith.constant 0 : i32
    %c0_i32_1 = arith.constant 0 : i32
    return %c0_i32, %c0_i32_0 : i32, i32
  }
  func.func @transform_3(%arg0: i32) -> (i32, i32) {
    %c0_i32 = arith.constant 0 : i32
    %c0_i32_0 = arith.constant 0 : i32
    %c0_i32_1 = arith.constant 0 : i32
    return %c0_i32, %c0_i32_0 : i32, i32
  }
  func.func @transform_4(%arg0: i32) -> (i32, i32, i32, i32) {
    %c0_i32 = arith.constant 0 : i32
    %c0_i32_0 = arith.constant 0 : i32
    %c0_i32_1 = arith.constant 0 : i32
    %c0_i32_2 = arith.constant 0 : i32
    return %c0_i32, %arg0, %c0_i32_0, %c0_i32_1 : i32, i32, i32, i32
  }
}

</mosaic_0001>

<bundles_post_ra>
// kernel: tpu_custom_call.1
= control target key start
LH: loop header
LB: loop body
LE: loop exit
PB: predicated region body
PF: predicated region fallthrough
CT: control target
= control target key end

     0   :  { %9 = vsyncpa [#allocation3], 0  ;;  %s2448_s0 = inlined_call_operand.hbm [shape: f32[2,128,256], index: 0, kind: input, shape index: {}]   ;;  %s2449_s1 = inlined_call_operand.hbm [shape: f32[32,128], index: 1, kind: input, shape index: {}]   ;;  %s2450_s2 = inlined_call_operand.hbm [shape: f32[256,1024], index: 2, kind: input, shape index: {}]   ;;  %s2451_s3 = inlined_call_operand.hbm [shape: f32[1,1024], index: 3, kind: input, shape index: {}]   ;;  %s2452_s4 = inlined_call_operand.vmem [shape: f32[2,2,10,1024], index: 4, kind: output, shape index: {}]  }
   0x1   :  { %11 = vsyncpa [#allocation3 + $0x1], 0 }
   0x2   :  { %12 = vsyncpa [#allocation5], 0 }
   0x3   :  { %13 = vsyncpa [#allocation8], 0  ;;  %s1832_s15 = smov 0   ;;  %s1834_s16 = smov 0  }
   0x4   :  { %s1836_s17 = smov 0   ;;  %s1838_s18 = smov 0  }
   0x5 LB: > { %s1851_s19 = sadd.s32 4294967295, %s1796_s18   ;;  %p39_p0 = scmp.ne.s32.totalorder %s1788_s16, %s1784_s15  ;;  %s1796_s18 = sphi %s1838_s18, %s2465_s18   ;;  %s1792_s17 = sphi %s1836_s17, %s2464_s17   ;;  %s1788_s16 = sphi %s1834_s16, %s2463_s16   ;;  %s1784_s15 = sphi %s1832_s15, %s2462_s15  }
   0x6   : > { %p40_p1 = scmp.eq.s32.totalorder %s1851_s19, 0  ;;  %p126_p2 = scmp.eq.s32.totalorder %s1851_s19, 1 }
   0x7   : > { %p1465_p3 = scmp.ge.s32.totalorder %s1796_s18, 1  ;;  %p139_p4 = scmp.lt.s32.totalorder %s1796_s18, 3 }
   0x8   : > { %p1860_p5 = por %p40_p1, %p39_p0  ;;  %s150_s24 = sshll.u32 %s2449_s1, 4  ;;  %s151_s24 = int_to_ptr.hbm [resolvable:$true] %s150_s24 }
   0x9   : > { %p1864_p6 = pnand %p1465_p3, %p139_p4  ;;  %s1798_s25 = smov [#allocation4]  }
   0xa   : > { %s152_s26 = sshll.u32 %s1798_s25, 4  ;;  %s164_s30 = sshll.u32 %s2450_s2, 4  ;;  %s153_s26 = int_to_ptr.vmem [resolvable:$true] %s152_s26  ;;  %s165_s30 = int_to_ptr.hbm [resolvable:$true] %s164_s30 }
   0xb   : > { %p1548_p7 = pneg %p1864_p6  ;;  %s1799_s5 = smov 128  }
   0xc   : > { %s1800_s6 = smov 8   ;;  %s1801_s7 = smov [#allocation6]  }
   0xd   : > { %p1875_p8 = pnand %p1548_p7, %p40_p1  ;;  %s166_s8 = sshll.u32 %s1801_s7, 4  ;;  %s167_s8 = int_to_ptr.vmem [resolvable:$true] %s166_s8 }
   0xe   : > { %s179_s11 = sshll.u32 %s2451_s3, 4  ;;  %s1802_s12 = smov 1024   ;;  %s180_s11 = int_to_ptr.hbm [resolvable:$true] %s179_s11 }
   0xf   : > { %1551 = dma.hbm_to_vmem [thread:$0]  (!%p1875_p8), %s151_s24, 512, %s153_s26, [#allocation5], %s1799_s5, %s1799_s5, %s1800_s6  }
  0x10   : > { %s1803_s13 = smov 64   ;;  %s1804_s14 = smov [#allocation7]  }
  0x11   : > { %1554 = dma.hbm_to_vmem [thread:$0]  (!%p1875_p8), %s165_s30, 32768, %s167_s8, [#allocation5], %s1802_s12, %s1802_s12, %s1803_s13  }
  0x12   : > { %s181_s15 = sshll.u32 %s1804_s14, 4  ;;  %s1892_s22 = sadd.s32 1, %s1796_s18   ;;  %s182_s15 = int_to_ptr.vmem [resolvable:$true] %s181_s15 }
  0x13   : > { %1557 = dma.hbm_to_vmem [thread:$0]  (!%p1875_p8), %s180_s11, 128, %s182_s15, [#allocation8]  }
  0x14   : > { %s26_s23 = sadd.s32 1, %s1792_s17  ;;  %s23_s24 = ssub.s32 %s1796_s18, %s1892_s22 }
  0x15   : > { %p33_p9 = scmp.ne.s32.totalorder %s1792_s17, %s1788_s16  ;;  %p24_p10 = scmp.eq.s32.totalorder %s23_s24, 0 }
  0x16   : > { %p34_p11 = scmp.eq.s32.totalorder %s1796_s18, 0  ;;  %p1565_p13 = scmp.lt.s32.totalorder %s1796_s18, 2 }
  0x17   : > { %p1902_p12 = por %p126_p2, %p33_p9  ;;  %s192_s28 = sand.u32 1, %s1792_s17  }
  0x18   : > { %s1908_s26 = scalar_select %p24_p10, %s1792_s17, %s26_s23  }
  0x19   : > { %p35_p0 = por %p34_p11, %p33_p9  ;;  %s1470_s27 = sshll.u32 %s192_s28, 8 }
  0x1a   : > { %s1500_s29 = sshll.u32 %s1796_s18, 8  ;;  %s196_s7 = scalar_lea.vmem [#allocation2], %s1470_s27 }
  0x1b   : > { %s201_s6 = scalar_lea.hbm %s2448_s0, %s1500_s29  ;;  %s204_s8 = sshll.u32 %s196_s7, 4  ;;  %s205_s8 = int_to_ptr.vmem [resolvable:$true] %s204_s8 }
  0x1c   : > { %s202_s9 = sshll.u32 %s201_s6, 4  ;;  %p1915_p2 = pnand %p1565_p13, %p35_p0  ;;  %s203_s9 = int_to_ptr.hbm [resolvable:$true] %s202_s9 }
  0x1d   : > { %s193_s11 = scalar_lea.sflag [#allocation3], %s192_s28  ;;  %s1724_s12 = sshra.s32 %s203_s9, 4  ;;  %s1725_s12 = int_to_ptr.hbm [resolvable:$true] %s1724_s12 }
  0x1e   : > { %s1726_s13 = scalar_lea.hbm %s1725_s12, 256  ;;  %p1728_p4 = pneg %p1915_p2 }
  0x1f   : > { %p1727_p3 = scmp.ne.s32.totalorder %s1725_s12, %s1726_s13  ;;  %s1731_s15 = scalar_lea.hbm %s2448_s0, 512 }
  0x20   : > { %p1732_p9 = scmp.lt.s32.totalorder %s1725_s12, %s2448_s0  ;;  %p1733_p10 = scmp.lt.s32.totalorder %s1731_s15, %s1726_s13 }
  0x21   : > { %p1729_p7 = pnand %p1728_p4, %p1727_p3 }
  0x22   : > { %p1734_p11 = por %p1733_p10, %p1732_p9 }
  0x23   : > { %p1730_p8 = pneg %p1729_p7 }
  0x25   : > { %p1735_p13 = pnand %p1734_p11, %p1730_p8 }
  0x27   : > { %1738 = shalt.err (!%p1735_p13)
}
  0x28   : > { %s1805_s28 = smov 256   ;;  %s1806_s27 = smov 16  }
  0x29   : > { %1561 = dma.hbm_to_vmem [thread:$0]  (!%p1915_p2), %s203_s9, 4096, %s205_s8, %s193_s11, %s1805_s28, %s1805_s28, %s1806_s27  }
  0x2a   : > { %216 = sbr.rel (%p1864_p6) target bundleno = 559 (0x22f), region = 36  ;;  %s218_s29 = sand.u32 (!%p1864_p6), 1, %s1788_s16  }
  0x2b   : > { %s1932_s30 = sshll.u32 (!%p1864_p6), %s218_s29, 8  ;;  %s219_s5 = scalar_lea.sflag (!%p1864_p6), [#allocation3], %s218_s29 }
  0x2c   : > { %s1935_s6 = scalar_lea.vmem (!%p1864_p6), [#allocation2], %s1932_s30 }
  0x2f   : > { %1771 = dma.done.wait (%p1860_p5), %s219_s5, 4096  }
  0x30   : > { %1773 = vsyncadd (%p1860_p5), %s219_s5, 4294963200 }
  0x31   : > { %1775 = dma.done.wait (%p40_p1), [#allocation5], 33280  }
  0x32   : > { %1777 = vsyncadd (%p40_p1), [#allocation5], 4294934016 }
  0x33   : > { %1779 = dma.done.wait (%p40_p1), [#allocation8], 128  }
  0x34   : > { %1781 = vsyncadd (%p40_p1), [#allocation8], 4294967168  ;;  %v292_v0 = vld [vmem:[%s1935_s6 + $0xf0] sm:$0xff]  ;;  %v293_v1 = vld [vmem:[%s1935_s6 + $0xf8] sm:$0xff]  ;;  %v356_v36 = vlaneseq  ;;  %s2320_s20 = scalar_lea.vmem [#allocation9], %s1932_s30  ;;  %s1501_s21 = sshll.u32 (%p1902_p12), %s1851_s19, 7 }
  0x35   : > { %v290_v2 = vld [vmem:[%s1935_s6 + $0xe0] sm:$0xff]  ;;  %298 = vmatpush.msra.mxu0 %v292_v0  ;;  %327 = vmatpush.msra.mxu1 %v293_v1  ;;  %v291_v3 = vld [vmem:[%s1935_s6 + $0xe8] sm:$0xff]  ;;  %v288_v4 = vld [vmem:[%s1935_s6 + $0xd0] sm:$0xff]  ;;  %s2371_s9 = scalar_lea.vmem (%p1902_p12), %s2452_s4, %s1501_s21 }
  0x36   : > { %v289_v5 = vld [vmem:[%s1935_s6 + $0xd8] sm:$0xff]  ;;  %v286_v6 = vld [vmem:[%s1935_s6 + $0xc0] sm:$0xff]  ;;  %v287_v7 = vld [vmem:[%s1935_s6 + $0xc8] sm:$0xff]  ;;  %v357_v37 = vshrl.u32 %v356_v36, 7 }
  0x37   : > { %299 = vmatpush.msra.mxu0 %v290_v2  ;;  %328 = vmatpush.msra.mxu1 %v291_v3  ;;  %v284_v8 = vld [vmem:[%s1935_s6 + $0xb0] sm:$0xff]  ;;  %v285_v9 = vld [vmem:[%s1935_s6 + $0xb8] sm:$0xff]  ;;  %v282_v10 = vld [vmem:[%s1935_s6 + $0xa0] sm:$0xff] }
  0x38   : > { %v283_v11 = vld [vmem:[%s1935_s6 + $0xa8] sm:$0xff]  ;;  %v280_v12 = vld [vmem:[%s1935_s6 + $0x90] sm:$0xff]  ;;  %v281_v13 = vld [vmem:[%s1935_s6 + $0x98] sm:$0xff]  ;;  %v1985_v40 = vadd.s32 8, %v357_v37 }
  0x39   : > { %300 = vmatpush.msra.mxu0 %v288_v4  ;;  %329 = vmatpush.msra.mxu1 %v289_v5  ;;  %v278_v14 = vld [vmem:[%s1935_s6 + $0x80] sm:$0xff]  ;;  %v279_v15 = vld [vmem:[%s1935_s6 + $0x88] sm:$0xff]  ;;  %v276_v16 = vld [vmem:[%s1935_s6 + $0x70] sm:$0xff] }
  0x3a   : > { %v277_v17 = vld [vmem:[%s1935_s6 + $0x78] sm:$0xff]  ;;  %v274_v18 = vld [vmem:[%s1935_s6 + $0x60] sm:$0xff]  ;;  %v275_v19 = vld [vmem:[%s1935_s6 + $0x68] sm:$0xff]  ;;  %vm360_vm0 = vcmp.lt.s32.totalorder %v1985_v40, 10 }
  0x3b   : > { %301 = vmatpush.msra.mxu0 %v286_v6  ;;  %330 = vmatpush.msra.mxu1 %v287_v7  ;;  %v272_v20 = vld [vmem:[%s1935_s6 + $0x50] sm:$0xff]  ;;  %v273_v21 = vld [vmem:[%s1935_s6 + $0x58] sm:$0xff]  ;;  %v270_v22 = vld [vmem:[%s1935_s6 + $0x40] sm:$0xff] }
  0x3c   : > { %v271_v23 = vld [vmem:[%s1935_s6 + $0x48] sm:$0xff]  ;;  %v268_v24 = vld [vmem:[%s1935_s6 + $0x30] sm:$0xff]  ;;  %v269_v25 = vld [vmem:[%s1935_s6 + $0x38] sm:$0xff] }
  0x3d   : > { %302 = vmatpush.msra.mxu0 %v284_v8  ;;  %331 = vmatpush.msra.mxu1 %v285_v9  ;;  %v266_v26 = vld [vmem:[%s1935_s6 + $0x20] sm:$0xff]  ;;  %v267_v27 = vld [vmem:[%s1935_s6 + $0x28] sm:$0xff]  ;;  %v264_v28 = vld [vmem:[%s1935_s6 + $0x10] sm:$0xff] }
  0x3e   : > { %v265_v29 = vld [vmem:[%s1935_s6 + $0x18] sm:$0xff]  ;;  %v262_v30 = vld [vmem:[%s1935_s6] sm:$0xff]  ;;  %v263_v31 = vld [vmem:[%s1935_s6 + $0x8] sm:$0xff] }
  0x3f   : > { %303 = vmatpush.msra.mxu0 %v282_v10  ;;  %332 = vmatpush.msra.mxu1 %v283_v11  ;;  %v294_v32 = vld [vmem:[#allocation4] sm:$0xff]  ;;  %v295_v33 = vld [vmem:[#allocation4 + $0x8] sm:$0xff]  ;;  %v296_v34 = vld [vmem:[#allocation4 + $0x10] sm:$0xff] }
  0x40   : > { %v297_v35 = vld [vmem:[#allocation4 + $0x18] sm:$0xff]  ;;  %v633_v47 = vld [vmem:[#allocation6 + $0x3c0] sm:$0xff]  ;;  %v634_v49 = vld [vmem:[#allocation6 + $0x3c8] sm:$0xff] }
  0x41   : > { %304 = vmatpush.msra.mxu0 %v280_v12  ;;  %333 = vmatpush.msra.mxu1 %v281_v13  ;;  %v761_v48 = vld [vmem:[#allocation6 + $0x7c0] sm:$0xff]  ;;  %v762_v50 = vld [vmem:[#allocation6 + $0x7c8] sm:$0xff] }
  0x42   : > { %787 = vmatpush.msra.mxu2 %v633_v47  ;;  %816 = vmatpush.msra.mxu3 %v761_v48  ;;  %v625_v53 = vld [vmem:[#allocation6 + $0x380] sm:$0xff]  ;;  %v626_v55 = vld [vmem:[#allocation6 + $0x388] sm:$0xff] }
  0x43   : > { %305 = vmatpush.msra.mxu0 %v278_v14  ;;  %334 = vmatpush.msra.mxu1 %v279_v15  ;;  %v753_v54 = vld [vmem:[#allocation6 + $0x780] sm:$0xff]  ;;  %v754_v56 = vld [vmem:[#allocation6 + $0x788] sm:$0xff] }
  0x44   : > { %788 = vmatpush.msra.mxu2 %v625_v53  ;;  %817 = vmatpush.msra.mxu3 %v753_v54  ;;  %v617_v59 = vld [vmem:[#allocation6 + $0x340] sm:$0xff]  ;;  %v618_v61 = vld [vmem:[#allocation6 + $0x348] sm:$0xff] }
  0x45   : > { %306 = vmatpush.msra.mxu0 %v276_v16  ;;  %335 = vmatpush.msra.mxu1 %v277_v17  ;;  %v745_v60 = vld [vmem:[#allocation6 + $0x740] sm:$0xff]  ;;  %v746_v62 = vld [vmem:[#allocation6 + $0x748] sm:$0xff] }
  0x46   : > { %789 = vmatpush.msra.mxu2 %v617_v59  ;;  %818 = vmatpush.msra.mxu3 %v745_v60  ;;  %v609_v3 = vld [vmem:[#allocation6 + $0x300] sm:$0xff]  ;;  %v610_v5 = vld [vmem:[#allocation6 + $0x308] sm:$0xff] }
  0x47   : > { %307 = vmatpush.msra.mxu0 %v274_v18  ;;  %336 = vmatpush.msra.mxu1 %v275_v19  ;;  %v737_v4 = vld [vmem:[#allocation6 + $0x700] sm:$0xff]  ;;  %v738_v6 = vld [vmem:[#allocation6 + $0x708] sm:$0xff] }
  0x48   : > { %790 = vmatpush.msra.mxu2 %v609_v3  ;;  %819 = vmatpush.msra.mxu3 %v737_v4  ;;  %v601_v9 = vld [vmem:[#allocation6 + $0x2c0] sm:$0xff]  ;;  %v602_v11 = vld [vmem:[#allocation6 + $0x2c8] sm:$0xff] }
  0x49   : > { %308 = vmatpush.msra.mxu0 %v272_v20  ;;  %337 = vmatpush.msra.mxu1 %v273_v21  ;;  %v729_v10 = vld [vmem:[#allocation6 + $0x6c0] sm:$0xff]  ;;  %v730_v12 = vld [vmem:[#allocation6 + $0x6c8] sm:$0xff] }
  0x4a   : > { %791 = vmatpush.msra.mxu2 %v601_v9  ;;  %820 = vmatpush.msra.mxu3 %v729_v10  ;;  %v593_v15 = vld [vmem:[#allocation6 + $0x280] sm:$0xff]  ;;  %v594_v17 = vld [vmem:[#allocation6 + $0x288] sm:$0xff] }
  0x4b   : > { %309 = vmatpush.msra.mxu0 %v270_v22  ;;  %338 = vmatpush.msra.mxu1 %v271_v23  ;;  %v721_v16 = vld [vmem:[#allocation6 + $0x680] sm:$0xff]  ;;  %v722_v18 = vld [vmem:[#allocation6 + $0x688] sm:$0xff] }
  0x4c   : > { %792 = vmatpush.msra.mxu2 %v593_v15  ;;  %821 = vmatpush.msra.mxu3 %v721_v16  ;;  %v585_v21 = vld [vmem:[#allocation6 + $0x240] sm:$0xff]  ;;  %v586_v23 = vld [vmem:[#allocation6 + $0x248] sm:$0xff] }
  0x4d   : > { %310 = vmatpush.msra.mxu0 %v268_v24  ;;  %339 = vmatpush.msra.mxu1 %v269_v25  ;;  %v713_v22 = vld [vmem:[#allocation6 + $0x640] sm:$0xff]  ;;  %v714_v24 = vld [vmem:[#allocation6 + $0x648] sm:$0xff] }
  0x4e   : > { %793 = vmatpush.msra.mxu2 %v585_v21  ;;  %822 = vmatpush.msra.mxu3 %v713_v22  ;;  %v706_v36 = vld [vmem:[#allocation6 + $0x608] sm:$0xff]  ;;  %v697_v40 = vld [vmem:[#allocation6 + $0x5c0] sm:$0xff] }
  0x4f   : > { %311 = vmatpush.msra.mxu0 %v266_v26  ;;  %340 = vmatpush.msra.mxu1 %v267_v27  ;;  %v698_v47 = vld [vmem:[#allocation6 + $0x5c8] sm:$0xff]  ;;  %v561_v48 = vld [vmem:[#allocation6 + $0x180] sm:$0xff] }
  0x50   : > { %v553_v54 = vld [vmem:[#allocation6 + $0x140] sm:$0xff]  ;;  %v666_v10 = vld [vmem:[#allocation6 + $0x4c8] sm:$0xff] }
  0x51   : > { %312 = vmatpush.msra.mxu0 %v264_v28  ;;  %341 = vmatpush.msra.mxu1 %v265_v29  ;;  %v545_v60 = vld [vmem:[#allocation6 + $0x100] sm:$0xff]  ;;  %v530_v16 = vld [vmem:[#allocation6 + $0x88] sm:$0xff] }
  0x52   : > { %v657_v15 = vld [vmem:[#allocation6 + $0x480] sm:$0xff] }
  0x53   : > { %313 = vmatpush.msra.mxu0 %v262_v30  ;;  %342 = vmatpush.msra.mxu1 %v263_v31  ;;  %v577_v31 = vld [vmem:[#allocation6 + $0x200] sm:$0xff] }
  0x54   : > { %314 = vmatmul.f32.vlgmr.msra.gmra.mxu0 %v294_v32  ;;  %343 = vmatmul.f32.vlgmr.msra.gmra.mxu1 %v294_v32  ;;  %v705_v32 = vld [vmem:[#allocation6 + $0x600] sm:$0xff] }
  0x55   : > { %845 = vmatpush.msrb.mxu0 %v634_v49  ;;  %874 = vmatpush.msrb.mxu1 %v762_v50  ;;  %v689_v49 = vld [vmem:[#allocation6 + $0x580] sm:$0xff] }
  0x56   : > { %794 = vmatpush.msra.mxu2 %v577_v31  ;;  %823 = vmatpush.msra.mxu3 %v705_v32  ;;  %v513_v32 = vld [vmem:[#allocation6] sm:$0xff] }
  0x57   : > { %846 = vmatpush.msrb.mxu0 %v626_v55  ;;  %875 = vmatpush.msrb.mxu1 %v754_v56  ;;  %v681_v55 = vld [vmem:[#allocation6 + $0x540] sm:$0xff]  ;;  %v554_v56 = vld [vmem:[#allocation6 + $0x148] sm:$0xff] }
  0x58   : > { %824 = vmatpush.msra.mxu3 %v697_v40 }
  0x59   : > { %847 = vmatpush.msrb.mxu0 %v618_v61  ;;  %876 = vmatpush.msrb.mxu1 %v746_v62  ;;  %v673_v61 = vld [vmem:[#allocation6 + $0x500] sm:$0xff]  ;;  %v546_v62 = vld [vmem:[#allocation6 + $0x108] sm:$0xff] }
  0x5a   : > { %825 = vmatpush.msra.mxu3 %v689_v49  ;;  %v755_v49 = vld [vmem:[#allocation6 + $0x790] sm:$0xff] }
  0x5b   : > { %848 = vmatpush.msrb.mxu0 %v610_v5  ;;  %877 = vmatpush.msrb.mxu1 %v738_v6  ;;  %v537_v5 = vld [vmem:[#allocation6 + $0xc0] sm:$0xff] }
  0x5c   : > { %317 = vmatmul.f32.gmra.mxu0 %v295_v33  ;;  %346 = vmatmul.f32.gmra.mxu1 %v295_v33  ;;  %v578_v33 = vld [vmem:[#allocation6 + $0x208] sm:$0xff]  ;;  %v665_v6 = vld [vmem:[#allocation6 + $0x4c0] sm:$0xff] }
  0x5d   : > { %849 = vmatpush.msrb.mxu0 %v602_v11  ;;  %878 = vmatpush.msrb.mxu1 %v730_v12 }
  0x5e   : > { %826 = vmatpush.msra.mxu3 %v681_v55  ;;  %v747_v55 = vld [vmem:[#allocation6 + $0x750] sm:$0xff] }
  0x5f   : > { %850 = vmatpush.msrb.mxu0 %v594_v17  ;;  %879 = vmatpush.msrb.mxu1 %v722_v18 }
  0x60   : > { %827 = vmatpush.msra.mxu3 %v673_v61  ;;  %v739_v61 = vld [vmem:[#allocation6 + $0x710] sm:$0xff] }
  0x61   : > { %851 = vmatpush.msrb.mxu0 %v586_v23  ;;  %880 = vmatpush.msrb.mxu1 %v714_v24  ;;  %v521_v23 = vld [vmem:[#allocation6 + $0x40] sm:$0xff] }
  0x62   : > { %828 = vmatpush.msra.mxu3 %v665_v6  ;;  %v649_v24 = vld [vmem:[#allocation6 + $0x440] sm:$0xff]  ;;  %v604_v6 = vld [vmem:[#allocation6 + $0x2d8] sm:$0xff] }
  0x63   : > { %852 = vmatpush.msrb.mxu0 %v578_v33  ;;  %881 = vmatpush.msrb.mxu1 %v706_v36  ;;  %v641_v33 = vld [vmem:[#allocation6 + $0x400] sm:$0xff]  ;;  %v514_v36 = vld [vmem:[#allocation6 + $0x8] sm:$0xff] }
  0x64   : > { %320 = vmatmul.f32.gmra.mxu0 %v296_v34  ;;  %349 = vmatmul.f32.gmra.mxu1 %v296_v34 }
  0x65   : > { %882 = vmatpush.msrb.mxu1 %v698_v47  ;;  %829 = vmatpush.msra.mxu3 %v657_v15  ;;  %v723_v15 = vld [vmem:[#allocation6 + $0x690] sm:$0xff] }
  0x67   : > { %830 = vmatpush.msra.mxu3 %v649_v24  ;;  %v588_v24 = vld [vmem:[#allocation6 + $0x258] sm:$0xff] }
  0x69   : > { %831 = vmatpush.msra.mxu3 %v641_v33 }
  0x6c   : > { %323 = vmatmul.f32.gmra.mxu0 %v297_v35  ;;  %352 = vmatmul.f32.gmra.mxu1 %v297_v35 }
  0xd1   : > { %v1981_v38 = vpop.f32.mrf.mxu0  ;;  %v1983_v39 = vpop.f32.mrf.mxu1 }
  0xd9   : > { %v318_v41 = vpop.f32.mrf.mxu0  ;;  %v347_v42 = vpop.f32.mrf.mxu1 }
  0xda   : > { %v1990_v43 = vsel %vm360_vm0, %v318_v41, -1e+30  ;;  %v1994_v44 = vsel %vm360_vm0, %v347_v42, -1e+30 }
  0xdb   : > { %v365_v45 = vmax.f32 %v1981_v38, %v1990_v43  ;;  %v372_v46 = vmax.f32 %v1983_v39, %v1994_v44 }
  0xdd   : > { %v366_v51 = vrot.slane %v365_v45, 4  ;;  %v373_v52 = vrot.slane %v372_v46, 4 }
  0xdf   : > { %v367_v57 = vmax.f32 %v365_v45, %v366_v51  ;;  %v374_v58 = vmax.f32 %v372_v46, %v373_v52  ;;  %v570_v45 = vld [vmem:[#allocation6 + $0x1c8] sm:$0xff] }
  0xe0   : > { %853 = vmatpush.msrb.mxu0 %v570_v45  ;;  %v562_v51 = vld [vmem:[#allocation6 + $0x188] sm:$0xff]  ;;  %v763_v45 = vld [vmem:[#allocation6 + $0x7d0] sm:$0xff] }
  0xe1   : > { %v368_v63 = vrot.slane %v367_v57, 2  ;;  %v375_v0 = vrot.slane %v374_v58, 2  ;;  %v2000_v1 = vpop.f32.mrf.mxu0  ;;  %v2002_v2 = vpop.f32.mrf.mxu1  ;;  %v690_v52 = vld [vmem:[#allocation6 + $0x588] sm:$0xff]  ;;  %932 = vmatpush.msrb.mxu3 %v763_v45 }
  0xe2   : > { %854 = vmatpush.msrb.mxu0 %v562_v51  ;;  %883 = vmatpush.msrb.mxu1 %v690_v52  ;;  %v756_v51 = vld [vmem:[#allocation6 + $0x798] sm:$0xff] }
  0xe3   : > { %v369_v7 = vmax.f32 %v367_v57, %v368_v63  ;;  %v376_v8 = vmax.f32 %v374_v58, %v375_v0  ;;  %v682_v58 = vld [vmem:[#allocation6 + $0x548] sm:$0xff]  ;;  %933 = vmatpush.msrb.mxu3 %v755_v49 }
  0xe4   : > { %855 = vmatpush.msrb.mxu0 %v554_v56  ;;  %884 = vmatpush.msrb.mxu1 %v682_v58  ;;  %v674_v0 = vld [vmem:[#allocation6 + $0x508] sm:$0xff]  ;;  %v620_v56 = vld [vmem:[#allocation6 + $0x358] sm:$0xff] }
  0xe5   : > { %v370_v13 = vrot.slane %v369_v7, 1  ;;  %v377_v14 = vrot.slane %v376_v8, 1  ;;  %934 = vmatpush.msrb.mxu3 %v747_v55  ;;  %v556_v55 = vld [vmem:[#allocation6 + $0x158] sm:$0xff] }
  0xe6   : > { %856 = vmatpush.msrb.mxu0 %v546_v62  ;;  %885 = vmatpush.msrb.mxu1 %v674_v0  ;;  %v612_v62 = vld [vmem:[#allocation6 + $0x318] sm:$0xff] }
  0xe7   : > { %v371_v19 = vmax.f32 %v369_v7, %v370_v13  ;;  %v378_v20 = vmax.f32 %v376_v8, %v377_v14  ;;  %v538_v7 = vld [vmem:[#allocation6 + $0xc8] sm:$0xff]  ;;  %v529_v14 = vld [vmem:[#allocation6 + $0x80] sm:$0xff]  ;;  %935 = vmatpush.msrb.mxu3 %v739_v61 }
  0xe8   : > { %857 = vmatpush.msrb.mxu0 %v538_v7  ;;  %886 = vmatpush.msrb.mxu1 %v666_v10  ;;  %v732_v10 = vld [vmem:[#allocation6 + $0x6d8] sm:$0xff] }
  0xe9   : > { %v379_v25 = vsub.f32 %v1981_v38, %v371_v19  ;;  %v381_v26 = vsub.f32 %v1990_v43, %v371_v19  ;;  %v380_v27 = vsub.f32 %v1983_v39, %v378_v20  ;;  %v382_v28 = vsub.f32 %v1994_v44, %v378_v20  ;;  %v324_v29 = vpop.f32.mrf.mxu0  ;;  %v353_v30 = vpop.f32.mrf.mxu1  ;;  %v569_v44 = vld [vmem:[#allocation6 + $0x1c0] sm:$0xff]  ;;  %v658_v19 = vld [vmem:[#allocation6 + $0x488] sm:$0xff] }
  0xea   : > { %v2010_v34 = vsel %vm360_vm0, %v324_v29, -1e+30  ;;  %v2014_v35 = vsel %vm360_vm0, %v353_v30, -1e+30  ;;  %795 = vmatpush.msra.mxu2 %v569_v44  ;;  %858 = vmatpush.msrb.mxu0 %v530_v16  ;;  %v596_v16 = vld [vmem:[#allocation6 + $0x298] sm:$0xff] }
  0xeb   : > { %v383_v37 = vmul.f32 1.442695, %v379_v25  ;;  %v387_v38 = vmul.f32 1.442695, %v381_v26  ;;  %v385_v39 = vmul.f32 1.442695, %v380_v27  ;;  %v441_v41 = vmax.f32 %v2000_v1, %v2010_v34  ;;  %887 = vmatpush.msrb.mxu1 %v658_v19 }
  0xec   : > { %v389_v42 = vmul.f32 1.442695, %v382_v28  ;;  %v448_v43 = vmax.f32 %v2002_v2, %v2014_v35  ;;  %796 = vmatpush.msra.mxu2 %v561_v48  ;;  %v522_v25 = vld [vmem:[#allocation6 + $0x48] sm:$0xff]  ;;  %v627_v48 = vld [vmem:[#allocation6 + $0x390] sm:$0xff]  ;;  %v724_v19 = vld [vmem:[#allocation6 + $0x698] sm:$0xff] }
  0xed   : > { %1610 = vpow2.f32 %v383_v37  ;;  %v442_v46 = vrot.slane %v441_v41, 4  ;;  %v650_v27 = vld [vmem:[#allocation6 + $0x448] sm:$0xff]  ;;  %859 = vmatpush.msrb.mxu0 %v522_v25  ;;  %v716_v25 = vld [vmem:[#allocation6 + $0x658] sm:$0xff] }
  0xee   : > { %1612 = vpow2.f32 %v387_v38  ;;  %v449_v50 = vrot.slane %v448_v43, 4  ;;  %797 = vmatpush.msra.mxu2 %v553_v54  ;;  %888 = vmatpush.msrb.mxu1 %v650_v27  ;;  %v619_v54 = vld [vmem:[#allocation6 + $0x350] sm:$0xff] }
  0xef   : > { %1614 = vpow2.f32 %v385_v39  ;;  %v443_v53 = vmax.f32 %v441_v41, %v442_v46  ;;  %v642_v39 = vld [vmem:[#allocation6 + $0x408] sm:$0xff]  ;;  %860 = vmatpush.msrb.mxu0 %v514_v36  ;;  %v636_v46 = vld [vmem:[#allocation6 + $0x3d8] sm:$0xff]  ;;  %v707_v27 = vld [vmem:[#allocation6 + $0x610] sm:$0xff] }
  0xf0   : > { %1616 = vpow2.f32 %v389_v42  ;;  %v450_v57 = vmax.f32 %v448_v43, %v449_v50  ;;  %798 = vmatpush.msra.mxu2 %v545_v60  ;;  %889 = vmatpush.msrb.mxu1 %v642_v39  ;;  %v628_v50 = vld [vmem:[#allocation6 + $0x398] sm:$0xff]  ;;  %v611_v60 = vld [vmem:[#allocation6 + $0x310] sm:$0xff] }
  0xf1   : > { %v444_v59 = vrot.slane %v443_v53, 2  ;;  %961 = vmatpush.msra.mxu0 %v636_v46  ;;  %v571_v36 = vld [vmem:[#allocation6 + $0x1d0] sm:$0xff] }
  0xf2   : > { %v451_v63 = vrot.slane %v450_v57, 2  ;;  %799 = vmatpush.msra.mxu2 %v537_v5  ;;  %v731_v5 = vld [vmem:[#allocation6 + $0x6d0] sm:$0xff] }
  0xf3   : > { %v2020_v3 = vpop.eup %1610  ;;  %v445_v4 = vmax.f32 %v443_v53, %v444_v59  ;;  %962 = vmatpush.msra.mxu0 %v628_v50  ;;  %936 = vmatpush.msrb.mxu3 %v731_v5  ;;  %v555_v50 = vld [vmem:[#allocation6 + $0x150] sm:$0xff] }
  0xf4   : > { %v2022_v8 = vpop.eup %1612  ;;  %v452_v9 = vmax.f32 %v450_v57, %v451_v63  ;;  %800 = vmatpush.msra.mxu2 %v529_v14  ;;  %v748_v57 = vld [vmem:[#allocation6 + $0x758] sm:$0xff]  ;;  %v595_v14 = vld [vmem:[#allocation6 + $0x290] sm:$0xff] }
  0xf5   : > { %v2024_v11 = vpop.eup %1614  ;;  %v391_v12 = vadd.f32 %v2022_v8, %v2020_v3  ;;  %v446_v13 = vrot.slane %v445_v4, 1  ;;  %963 = vmatpush.msra.mxu0 %v620_v56  ;;  %v740_v63 = vld [vmem:[#allocation6 + $0x718] sm:$0xff]  ;;  %937 = vmatpush.msrb.mxu3 %v723_v15 }
  0xf6   : > { %v2028_v17 = vpop.eup %1616  ;;  %v453_v18 = vrot.slane %v452_v9, 1  ;;  %801 = vmatpush.msra.mxu2 %v521_v23  ;;  %v715_v23 = vld [vmem:[#allocation6 + $0x650] sm:$0xff]  ;;  %v684_v56 = vld [vmem:[#allocation6 + $0x558] sm:$0xff] }
  0xf7   : > { %v392_v20 = vrot.slane %v391_v12, 4  ;;  %v398_v21 = vadd.f32 %v2028_v17, %v2024_v11  ;;  %v447_v22 = vmax.f32 %v445_v4, %v446_v13  ;;  %v603_v4 = vld [vmem:[#allocation6 + $0x2d0] sm:$0xff]  ;;  %964 = vmatpush.msra.mxu0 %v612_v62  ;;  %938 = vmatpush.msrb.mxu3 %v715_v23  ;;  %v540_v23 = vld [vmem:[#allocation6 + $0xd8] sm:$0xff] }
  0xf8   : > { %v454_v26 = vmax.f32 %v452_v9, %v453_v18  ;;  %802 = vmatpush.msra.mxu2 %v513_v32  ;;  %v708_v32 = vld [vmem:[#allocation6 + $0x618] sm:$0xff]  ;;  %v547_v62 = vld [vmem:[#allocation6 + $0x110] sm:$0xff] }
  0xf9   : > { %v393_v28 = vadd.f32 %v392_v20, %v391_v12  ;;  %v399_v29 = vrot.slane %v398_v21, 4  ;;  %v455_v30 = vsub.f32 %v2000_v1, %v447_v22  ;;  %v457_v31 = vsub.f32 %v2010_v34, %v447_v22  ;;  %v635_v1 = vld [vmem:[#allocation6 + $0x3d0] sm:$0xff]  ;;  %965 = vmatpush.msra.mxu0 %v604_v6  ;;  %939 = vmatpush.msrb.mxu3 %v707_v27 }
  0xfa   : > { %v456_v37 = vsub.f32 %v2002_v2, %v454_v26  ;;  %v458_v38 = vsub.f32 %v2014_v35, %v454_v26  ;;  %903 = vmatpush.msrb.mxu2 %v635_v1  ;;  %v764_v35 = vld [vmem:[#allocation6 + $0x7d8] sm:$0xff]  ;;  %v587_v22 = vld [vmem:[#allocation6 + $0x250] sm:$0xff] }
  0xfb   : > { %v394_v41 = vrot.slane %v393_v28, 2  ;;  %v400_v42 = vadd.f32 %v399_v29, %v398_v21  ;;  %v459_v43 = vmul.f32 1.442695, %v455_v30  ;;  %v463_v44 = vmul.f32 1.442695, %v457_v31  ;;  %990 = vmatpush.msra.mxu1 %v764_v35  ;;  %966 = vmatpush.msra.mxu0 %v596_v16  ;;  %v579_v26 = vld [vmem:[#allocation6 + $0x210] sm:$0xff] }
  0xfc   : > { %v461_v34 = vmul.f32 1.442695, %v456_v37  ;;  %v465_v40 = vmul.f32 1.442695, %v458_v38  ;;  %904 = vmatpush.msrb.mxu2 %v627_v48  ;;  %v580_v31 = vld [vmem:[#allocation6 + $0x218] sm:$0xff]  ;;  %v699_v37 = vld [vmem:[#allocation6 + $0x5d0] sm:$0xff] }
  0xfd   : > { %v395_v47 = vadd.f32 %v394_v41, %v393_v28  ;;  %v401_v2 = vrot.slane %v400_v42, 2  ;;  %1618 = vpow2.f32 %v459_v43  ;;  %991 = vmatpush.msra.mxu1 %v756_v51  ;;  %967 = vmatpush.msra.mxu0 %v588_v24  ;;  %v572_v41 = vld [vmem:[#allocation6 + $0x1d8] sm:$0xff]  ;;  %v683_v51 = vld [vmem:[#allocation6 + $0x550] sm:$0xff] }
  0xfe   : > { %1620 = vpow2.f32 %v463_v44  ;;  %905 = vmatpush.msrb.mxu2 %v619_v54  ;;  %940 = vmatpush.msrb.mxu3 %v699_v37  ;;  %v692_v35 = vld [vmem:[#allocation6 + $0x598] sm:$0xff]  ;;  %v667_v16 = vld [vmem:[#allocation6 + $0x4d0] sm:$0xff] }
  0xff   : > { %v396_v52 = vrot.slane %v395_v47, 1  ;;  %v402_v53 = vadd.f32 %v401_v2, %v400_v42  ;;  %1622 = vpow2.f32 %v461_v34  ;;  %992 = vmatpush.msra.mxu1 %v748_v57  ;;  %v700_v42 = vld [vmem:[#allocation6 + $0x5d8] sm:$0xff]  ;;  %968 = vmatpush.msra.mxu0 %v580_v31  ;;  %v563_v34 = vld [vmem:[#allocation6 + $0x190] sm:$0xff] }
 0x100   : > { %1624 = vpow2.f32 %v465_v40  ;;  %906 = vmatpush.msrb.mxu2 %v611_v60  ;;  %v691_v40 = vld [vmem:[#allocation6 + $0x590] sm:$0xff]  ;;  %v564_v2 = vld [vmem:[#allocation6 + $0x198] sm:$0xff] }
 0x101   : > { %v2036_v58 = vadd.f32 %v396_v52, %v395_v47  ;;  %v403_v59 = vrot.slane %v402_v53, 1  ;;  %993 = vmatpush.msra.mxu1 %v740_v63  ;;  %969 = vmatpush.msra.mxu0 %v572_v41  ;;  %v675_v63 = vld [vmem:[#allocation6 + $0x510] sm:$0xff]  ;;  %v668_v24 = vld [vmem:[#allocation6 + $0x4d8] sm:$0xff] }
 0x102   : > { %907 = vmatpush.msrb.mxu2 %v603_v4  ;;  %941 = vmatpush.msrb.mxu3 %v691_v40  ;;  %v659_v27 = vld [vmem:[#allocation6 + $0x490] sm:$0xff]  ;;  %v652_v37 = vld [vmem:[#allocation6 + $0x458] sm:$0xff] }
 0x103   : > { %v2038_v0 = vpop.eup %1618  ;;  %1626 = vrcp.f32 %v2036_v58  ;;  %v2043_v9 = vadd.f32 %v403_v59, %v402_v53  ;;  %994 = vmatpush.msra.mxu1 %v732_v10  ;;  %v416_v1 = vand.u32 2147483648, %v2036_v58  ;;  %v414_v49 = vand.u32 2147483647, %v2036_v58  ;;  %970 = vmatpush.msra.mxu0 %v564_v2  ;;  %v523_v31 = vld [vmem:[#allocation6 + $0x50] sm:$0xff] }
 0x104   : > { %v2041_v7 = vpop.eup %1620  ;;  %908 = vmatpush.msrb.mxu2 %v595_v14  ;;  %vm410_vm2 = vweird.f32 %v2036_v58  ;;  %942 = vmatpush.msrb.mxu3 %v683_v51  ;;  %v676_v14 = vld [vmem:[#allocation6 + $0x518] sm:$0xff]  ;;  %v629_v51 = vld [vmem:[#allocation6 + $0x3a0] sm:$0xff] }
 0x105   : > { %v2045_v12 = vpop.eup %1622  ;;  %v467_v13 = vadd.f32 %v2041_v7, %v2038_v0  ;;  %1628 = vrcp.f32 %v2043_v9  ;;  %995 = vmatpush.msra.mxu1 %v724_v19  ;;  %v417_v59 = vor.u32 1.1754944e-38, %v416_v1  ;;  %v428_v60 = vand.u32 2147483647, %v2043_v9  ;;  %971 = vmatpush.msra.mxu0 %v556_v55  ;;  %v630_v55 = vld [vmem:[#allocation6 + $0x3a8] sm:$0xff] }
 0x106   : > { %v2049_v18 = vpop.eup %1624  ;;  %909 = vmatpush.msrb.mxu2 %v587_v22  ;;  %v430_v61 = vand.u32 2147483648, %v2043_v9  ;;  %vm415_vm5 = vcmp.eq.f32.partialorder %v414_v49, 8.507059e+37  ;;  %vm424_vm6 = vweird.f32 %v2043_v9  ;;  %943 = vmatpush.msrb.mxu3 %v675_v63 }
 0x107   : > { %v468_v20 = vrot.slane %v467_v13, 4  ;;  %v474_v21 = vadd.f32 %v2049_v18, %v2045_v12  ;;  %996 = vmatpush.msra.mxu1 %v716_v25  ;;  %vm429_vm8 = vcmp.eq.f32.partialorder %v428_v60, 8.507059e+37 }
 0x108   : > { %910 = vmatpush.msrb.mxu2 %v579_v26  ;;  %v431_v22 = vor.u32 1.1754944e-38, %v430_v61  ;;  %944 = vmatpush.msrb.mxu3 %v667_v16  ;;  %v621_v61 = vld [vmem:[#allocation6 + $0x360] sm:$0xff]  ;;  %v742_v16 = vld [vmem:[#allocation6 + $0x728] sm:$0xff] }
 0x109   : > { %v2054_v28 = vpop.eup %1626  ;;  %v469_v29 = vadd.f32 %v468_v20, %v467_v13  ;;  %v475_v30 = vrot.slane %v474_v21, 4  ;;  %997 = vmatpush.msra.mxu1 %v708_v32  ;;  %v548_v13 = vld [vmem:[#allocation6 + $0x118] sm:$0xff]  ;;  %v651_v32 = vld [vmem:[#allocation6 + $0x450] sm:$0xff] }
 0x10a   : > { %v406_v33 = vmul.f32 %v2054_v28, %v2036_v58  ;;  %911 = vmatpush.msrb.mxu2 %v571_v36  ;;  %vm411_vm1 = vweird.f32 %v2054_v28  ;;  %v539_v58 = vld [vmem:[#allocation6 + $0xd0] sm:$0xff]  ;;  %972 = vmatpush.msra.mxu0 %v548_v13  ;;  %v524_v36 = vld [vmem:[#allocation6 + $0x58] sm:$0xff] }
 0x10b   : > { %v470_v38 = vrot.slane %v469_v29, 2  ;;  %v476_v39 = vadd.f32 %v475_v30, %v474_v21  ;;  %v2058_v43 = vpop.eup %1628  ;;  %998 = vmatpush.msra.mxu1 %v700_v42  ;;  %vm2074_vm3 = vmor %vm410_vm2, %vm411_vm1  ;;  %v660_v30 = vld [vmem:[#allocation6 + $0x498] sm:$0xff]  ;;  %945 = vmatpush.msrb.mxu3 %v659_v27 }
 0x10c   : > { %v407_v44 = vsub.f32 1.0, %v406_v33  ;;  %v420_v45 = vmul.f32 %v2058_v43, %v2043_v9  ;;  %912 = vmatpush.msrb.mxu2 %v563_v34  ;;  %vm425_vm4 = vweird.f32 %v2058_v43  ;;  %v531_v9 = vld [vmem:[#allocation6 + $0x90] sm:$0xff]  ;;  %973 = vmatpush.msra.mxu0 %v540_v23  ;;  %v733_v23 = vld [vmem:[#allocation6 + $0x6e0] sm:$0xff] }
 0x10d   : > { %v471_v46 = vadd.f32 %v470_v38, %v469_v29  ;;  %v477_v47 = vrot.slane %v476_v39, 2  ;;  %999 = vmatpush.msra.mxu1 %v692_v35  ;;  %vm426_vm7 = vmor %vm424_vm6, %vm425_vm4  ;;  %v532_v29 = vld [vmem:[#allocation6 + $0x98] sm:$0xff]  ;;  %v515_v38 = vld [vmem:[#allocation6 + $0x10] sm:$0xff]  ;;  %946 = vmatpush.msrb.mxu3 %v651_v32 }
 0x10e   : > { %v408_v48 = vmul.f32 %v2054_v28, %v407_v44  ;;  %v421_v52 = vsub.f32 1.0, %v420_v45  ;;  %913 = vmatpush.msrb.mxu2 %v555_v50  ;;  %974 = vmatpush.msra.mxu0 %v532_v29  ;;  %v644_v44 = vld [vmem:[#allocation6 + $0x418] sm:$0xff]  ;;  %v637_v45 = vld [vmem:[#allocation6 + $0x3e0] sm:$0xff]  ;;  %v638_v35 = vld [vmem:[#allocation6 + $0x3e8] sm:$0xff] }
 0x10f   : > { %v472_v53 = vrot.slane %v471_v46, 1  ;;  %v478_v54 = vadd.f32 %v477_v47, %v476_v39  ;;  %1000 = vmatpush.msra.mxu1 %v684_v56  ;;  %v643_v39 = vld [vmem:[#allocation6 + $0x410] sm:$0xff]  ;;  %v758_v56 = vld [vmem:[#allocation6 + $0x7a8] sm:$0xff]  ;;  %v589_v29 = vld [vmem:[#allocation6 + $0x260] sm:$0xff] }
 0x110   : > { %v409_v57 = vadd.f32 %v2054_v28, %v408_v48  ;;  %v422_v5 = vmul.f32 %v2058_v43, %v421_v52  ;;  %914 = vmatpush.msrb.mxu2 %v547_v62  ;;  %975 = vmatpush.msra.mxu0 %v524_v36  ;;  %v766_v48 = vld [vmem:[#allocation6 + $0x7e8] sm:$0xff]  ;;  %v757_v52 = vld [vmem:[#allocation6 + $0x7a0] sm:$0xff] }
 0x111   : > { %v2080_v6 = vadd.f32 %v472_v53, %v471_v46  ;;  %v479_v10 = vrot.slane %v478_v54, 1  ;;  %1001 = vmatpush.msra.mxu1 %v676_v14  ;;  %947 = vmatpush.msrb.mxu3 %v643_v39  ;;  %v765_v46 = vld [vmem:[#allocation6 + $0x7e0] sm:$0xff]  ;;  %v718_v32 = vld [vmem:[#allocation6 + $0x668] sm:$0xff] }
 0x112   : > { %v413_v15 = vsel %vm2074_vm3, %v2054_v28, %v409_v57  ;;  %v423_v20 = vadd.f32 %v2058_v43, %v422_v5  ;;  %915 = vmatpush.msrb.mxu2 %v539_v58  ;;  %v749_v62 = vld [vmem:[#allocation6 + $0x760] sm:$0xff]  ;;  %v670_v53 = vld [vmem:[#allocation6 + $0x4e8] sm:$0xff] }
 0x113   : > { %v418_v19 = vsel %vm415_vm5, %v417_v59, %v413_v15  ;;  %1630 = vrcp.f32 %v2080_v6  ;;  %v2094_v26 = vadd.f32 %v479_v10, %v478_v54  ;;  %1002 = vmatpush.msra.mxu1 %v668_v24  ;;  %v490_v34 = vand.u32 2147483647, %v2080_v6  ;;  %v750_v10 = vld [vmem:[#allocation6 + $0x768] sm:$0xff]  ;;  %v613_v14 = vld [vmem:[#allocation6 + $0x320] sm:$0xff] }
 0x114   : > { %v2089_v21 = vmul.f32 %v2020_v3, %v418_v19  ;;  %v427_v25 = vsel %vm426_vm7, %v2058_v43, %v423_v20  ;;  %916 = vmatpush.msrb.mxu2 %v531_v9  ;;  %v2106_v41 = vmul.f32 %v2022_v8, %v418_v19  ;;  %v516_v43 = vld [vmem:[#allocation6 + $0x18] sm:$0xff]  ;;  %v492_v40 = vand.u32 2147483648, %v2080_v6  ;;  %v741_v15 = vld [vmem:[#allocation6 + $0x720] sm:$0xff]  ;;  %v606_v24 = vld [vmem:[#allocation6 + $0x2e8] sm:$0xff] }
 0x115   : > { %v432_v28 = vsel %vm429_vm8, %v431_v22, %v427_v25  ;;  %1632 = vrcp.f32 %v2094_v26  ;;  %1003 = vmatpush.msra.mxu1 %v660_v30  ;;  %976 = vmatpush.msra.mxu0 %v516_v43  ;;  %vm486_vm10 = vweird.f32 %v2080_v6  ;;  %vm491_vm12 = vcmp.eq.f32.partialorder %v490_v34, 8.507059e+37  ;;  %v605_v22 = vld [vmem:[#allocation6 + $0x2e0] sm:$0xff]  ;;  %v734_v25 = vld [vmem:[#allocation6 + $0x6e8] sm:$0xff] }
 0x116   : > { %803 = vmatmul.f32.vlgmr.msra.gmra.mxu2 %v2089_v21  ;;  %861 = vmatmul.f32.vlgmr.msrb.gmra.mxu0 %v2089_v21  ;;  %v2099_v3 = vmul.f32 %v2024_v11, %v432_v28  ;;  %v2117_v2 = vmul.f32 %v2028_v17, %v432_v28  ;;  %v493_v17 = vor.u32 1.1754944e-38, %v492_v40  ;;  %v506_v54 = vand.u32 2147483648, %v2094_v26  ;;  %v725_v9 = vld [vmem:[#allocation6 + $0x6a0] sm:$0xff]  ;;  %v726_v28 = vld [vmem:[#allocation6 + $0x6a8] sm:$0xff] }
 0x117   : > { %917 = vmatpush.msrb.mxu2 %v523_v31  ;;  %1004 = vmatpush.msra.mxu1 %v652_v37  ;;  %v504_v60 = vand.u32 2147483647, %v2094_v26  ;;  %vm500_vm14 = vweird.f32 %v2094_v26  ;;  %v717_v30 = vld [vmem:[#allocation6 + $0x660] sm:$0xff]  ;;  %v590_v31 = vld [vmem:[#allocation6 + $0x268] sm:$0xff] }
 0x118   : > { %832 = vmatmul.f32.vlgmr.msra.gmra.mxu3 %v2099_v3  ;;  %890 = vmatmul.f32.vlgmr.msrb.gmra.mxu1 %v2099_v3  ;;  %v507_v13 = vor.u32 1.1754944e-38, %v506_v54  ;;  %v709_v36 = vld [vmem:[#allocation6 + $0x620] sm:$0xff]  ;;  %v582_v37 = vld [vmem:[#allocation6 + $0x228] sm:$0xff] }
 0x119   : > { %v1631_v33 = vpop.eup %1630  ;;  %918 = vmatpush.msrb.mxu2 %v515_v38  ;;  %1005 = vmatpush.msra.mxu1 %v644_v44  ;;  %vm505_vm0 = vcmp.eq.f32.partialorder %v504_v60, 8.507059e+37  ;;  %v573_v38 = vld [vmem:[#allocation6 + $0x1e0] sm:$0xff]  ;;  %v694_v34 = vld [vmem:[#allocation6 + $0x5a8] sm:$0xff] }
 0x11a   : > { %v482_v11 = vmul.f32 %v1631_v33, %v2080_v6  ;;  %vm487_vm9 = vweird.f32 %v1631_v33  ;;  %1048 = vmatpush.msra.mxu3 %v765_v46  ;;  %1077 = vmatpush.msrb.mxu0 %v638_v35  ;;  %v622_v6 = vld [vmem:[#allocation6 + $0x368] sm:$0xff]  ;;  %v701_v39 = vld [vmem:[#allocation6 + $0x5e0] sm:$0xff] }
 0x11b   : > { %v2108_v1 = vpop.eup %1632  ;;  %1019 = vmatpush.msra.mxu2 %v637_v45  ;;  %vm2121_vm11 = vmor %vm486_vm10, %vm487_vm9  ;;  %1106 = vmatpush.msrb.mxu1 %v766_v48  ;;  %v565_v43 = vld [vmem:[#allocation6 + $0x1a0] sm:$0xff]  ;;  %v558_v46 = vld [vmem:[#allocation6 + $0x168] sm:$0xff] }
 0x11c   : > { %v483_v42 = vsub.f32 1.0, %v482_v11  ;;  %v496_v8 = vmul.f32 %v2108_v1, %v2094_v26  ;;  %vm501_vm13 = vweird.f32 %v2108_v1  ;;  %1049 = vmatpush.msra.mxu3 %v757_v52  ;;  %1078 = vmatpush.msrb.mxu0 %v630_v55  ;;  %v597_v26 = vld [vmem:[#allocation6 + $0x2a0] sm:$0xff]  ;;  %v710_v11 = vld [vmem:[#allocation6 + $0x628] sm:$0xff] }
 0x11d   : > { %1020 = vmatpush.msra.mxu2 %v629_v51  ;;  %1107 = vmatpush.msrb.mxu1 %v758_v56  ;;  %vm502_vm15 = vmor %vm500_vm14, %vm501_vm13  ;;  %v693_v44 = vld [vmem:[#allocation6 + $0x5a0] sm:$0xff]  ;;  %v550_v48 = vld [vmem:[#allocation6 + $0x128] sm:$0xff] }
 0x11e   : > { %v484_v47 = vmul.f32 %v1631_v33, %v483_v42  ;;  %806 = vmatmul.f32.gmra.mxu2 %v2106_v41  ;;  %864 = vmatmul.f32.gmra.mxu0 %v2106_v41  ;;  %v497_v50 = vsub.f32 1.0, %v496_v8  ;;  %v702_v42 = vld [vmem:[#allocation6 + $0x5e8] sm:$0xff]  ;;  %v557_v40 = vld [vmem:[#allocation6 + $0x160] sm:$0xff] }
 0x11f   : > { %1021 = vmatpush.msra.mxu2 %v621_v61  ;;  %1050 = vmatpush.msra.mxu3 %v749_v62  ;;  %v685_v45 = vld [vmem:[#allocation6 + $0x560] sm:$0xff]  ;;  %v542_v52 = vld [vmem:[#allocation6 + $0xe8] sm:$0xff] }
 0x120   : > { %v485_v49 = vadd.f32 %v1631_v33, %v484_v47  ;;  %835 = vmatmul.f32.gmra.mxu3 %v2117_v2  ;;  %893 = vmatmul.f32.gmra.mxu1 %v2117_v2  ;;  %v498_v59 = vmul.f32 %v2108_v1, %v497_v50  ;;  %v686_v47 = vld [vmem:[#allocation6 + $0x568] sm:$0xff]  ;;  %v549_v8 = vld [vmem:[#allocation6 + $0x120] sm:$0xff] }
 0x121   : > { %1079 = vmatpush.msrb.mxu0 %v622_v6  ;;  %1108 = vmatpush.msrb.mxu1 %v750_v10  ;;  %v677_v35 = vld [vmem:[#allocation6 + $0x520] sm:$0xff]  ;;  %v534_v55 = vld [vmem:[#allocation6 + $0xa8] sm:$0xff]  ;;  %v639_v10 = vld [vmem:[#allocation6 + $0x3f0] sm:$0xff] }
 0x122   : > { %v489_v57 = vsel %vm2121_vm11, %v1631_v33, %v485_v49  ;;  %v499_v5 = vadd.f32 %v2108_v1, %v498_v59  ;;  %1022 = vmatpush.msra.mxu2 %v613_v14  ;;  %1051 = vmatpush.msra.mxu3 %v741_v15  ;;  %v678_v49 = vld [vmem:[#allocation6 + $0x528] sm:$0xff]  ;;  %v541_v50 = vld [vmem:[#allocation6 + $0xe0] sm:$0xff]  ;;  %v2168_v14 = vld [vmem:[#allocation6 + $0x3f8] sm:$0xff] }
 0x123   : > { %v494_v63 = vsel %vm491_vm12, %v493_v17, %v489_v57  ;;  %1109 = vmatpush.msrb.mxu1 %v742_v16  ;;  %v669_v51 = vld [vmem:[#allocation6 + $0x4e0] sm:$0xff]  ;;  %v662_v56 = vld [vmem:[#allocation6 + $0x4a8] sm:$0xff]  ;;  %v2170_v15 = vld [vmem:[#allocation6 + $0x7f8] sm:$0xff] }
 0x124   : > { %v2134_v4 = vmul.f32 %v2038_v0, %v494_v63  ;;  %v503_v58 = vsel %vm502_vm15, %v2108_v1, %v499_v5  ;;  %v614_v0 = vld [vmem:[#allocation6 + $0x328] sm:$0xff]  ;;  %1023 = vmatpush.msra.mxu2 %v605_v22  ;;  %1052 = vmatpush.msra.mxu3 %v733_v23  ;;  %v2149_v27 = vmul.f32 %v2041_v7, %v494_v63  ;;  %v581_v7 = vld [vmem:[#allocation6 + $0x220] sm:$0xff]  ;;  %v2176_v16 = vld [vmem:[#allocation6 + $0x3b8] sm:$0xff] }
 0x125   : > { %v508_v19 = vsel %vm505_vm0, %v507_v13, %v503_v58  ;;  %1080 = vmatpush.msrb.mxu0 %v614_v0  ;;  %1110 = vmatpush.msrb.mxu1 %v734_v25  ;;  %v566_v1 = vld [vmem:[#allocation6 + $0x1a8] sm:$0xff]  ;;  %v533_v17 = vld [vmem:[#allocation6 + $0xa0] sm:$0xff]  ;;  %v767_v13 = vld [vmem:[#allocation6 + $0x7f0] sm:$0xff] }
 0x126   : > { %809 = vmatmul.f32.gmra.mxu2 %v2134_v4  ;;  %867 = vmatmul.f32.gmra.mxu0 %v2134_v4  ;;  %v2144_v20 = vmul.f32 %v2045_v12, %v508_v19  ;;  %v598_v12 = vld [vmem:[#allocation6 + $0x2a8] sm:$0xff]  ;;  %v2154_v33 = vmul.f32 %v2049_v18, %v508_v19  ;;  %v661_v54 = vld [vmem:[#allocation6 + $0x4a0] sm:$0xff]  ;;  %v631_v58 = vld [vmem:[#allocation6 + $0x3b0] sm:$0xff] }
 0x127   : > { %1081 = vmatpush.msrb.mxu0 %v606_v24  ;;  %1024 = vmatpush.msra.mxu2 %v597_v26  ;;  %v574_v18 = vld [vmem:[#allocation6 + $0x1e8] sm:$0xff]  ;;  %v525_v57 = vld [vmem:[#allocation6 + $0x60] sm:$0xff]  ;;  %v759_v0 = vld [vmem:[#allocation6 + $0x7b0] sm:$0xff] }
 0x128   : > { %838 = vmatmul.f32.gmra.mxu3 %v2144_v20  ;;  %896 = vmatmul.f32.gmra.mxu1 %v2144_v20  ;;  %v653_v59 = vld [vmem:[#allocation6 + $0x460] sm:$0xff]  ;;  %v526_v60 = vld [vmem:[#allocation6 + $0x68] sm:$0xff]  ;;  %v2178_v19 = vld [vmem:[#allocation6 + $0x7b8] sm:$0xff] }
 0x129   : > { %1053 = vmatpush.msra.mxu3 %v725_v9  ;;  %1082 = vmatpush.msrb.mxu0 %v598_v12  ;;  %v654_v61 = vld [vmem:[#allocation6 + $0x468] sm:$0xff]  ;;  %v517_v62 = vld [vmem:[#allocation6 + $0x20] sm:$0xff]  ;;  %v623_v22 = vld [vmem:[#allocation6 + $0x370] sm:$0xff] }
 0x12a   : > { %1111 = vmatpush.msrb.mxu1 %v726_v28  ;;  %1025 = vmatpush.msra.mxu2 %v589_v29  ;;  %v645_v63 = vld [vmem:[#allocation6 + $0x420] sm:$0xff]  ;;  %v518_v5 = vld [vmem:[#allocation6 + $0x28] sm:$0xff]  ;;  %v751_v23 = vld [vmem:[#allocation6 + $0x770] sm:$0xff] }
 0x12b   : > { %1054 = vmatpush.msra.mxu3 %v717_v30  ;;  %1083 = vmatpush.msrb.mxu0 %v590_v31  ;;  %v646_v6 = vld [vmem:[#allocation6 + $0x428] sm:$0xff]  ;;  %v2182_v24 = vld [vmem:[#allocation6 + $0x378] sm:$0xff]  ;;  %v615_v26 = vld [vmem:[#allocation6 + $0x330] sm:$0xff] }
 0x12c   : > { %1112 = vmatpush.msrb.mxu1 %v718_v32  ;;  %1026 = vmatpush.msra.mxu2 %v581_v7  ;;  %v2184_v25 = vld [vmem:[#allocation6 + $0x778] sm:$0xff]  ;;  %v743_v9 = vld [vmem:[#allocation6 + $0x730] sm:$0xff] }
 0x12d   : > { %1055 = vmatpush.msra.mxu3 %v709_v36  ;;  %1084 = vmatpush.msrb.mxu0 %v582_v37  ;;  %v2190_v12 = vld [vmem:[#allocation6 + $0x338] sm:$0xff]  ;;  %v607_v29 = vld [vmem:[#allocation6 + $0x2f0] sm:$0xff] }
 0x12e   : > { %812 = vmatmul.f32.gmra.mxu2 %v2149_v27  ;;  %870 = vmatmul.f32.gmra.mxu0 %v2149_v27  ;;  %v2192_v28 = vld [vmem:[#allocation6 + $0x738] sm:$0xff]  ;;  %v735_v30 = vld [vmem:[#allocation6 + $0x6f0] sm:$0xff] }
 0x12f   : > { %1113 = vmatpush.msrb.mxu1 %v710_v11  ;;  %1027 = vmatpush.msra.mxu2 %v573_v38  ;;  %v2198_v31 = vld [vmem:[#allocation6 + $0x2f8] sm:$0xff]  ;;  %v599_v7 = vld [vmem:[#allocation6 + $0x2b0] sm:$0xff] }
 0x130   : > { %841 = vmatmul.f32.gmra.mxu3 %v2154_v33  ;;  %899 = vmatmul.f32.gmra.mxu1 %v2154_v33  ;;  %v2200_v32 = vld [vmem:[#allocation6 + $0x6f8] sm:$0xff]  ;;  %v727_v36 = vld [vmem:[#allocation6 + $0x6b0] sm:$0xff] }
 0x131   : > { %1056 = vmatpush.msra.mxu3 %v701_v39  ;;  %1085 = vmatpush.msrb.mxu0 %v574_v18  ;;  %v2204_v37 = vld [vmem:[#allocation6 + $0x2b8] sm:$0xff]  ;;  %v591_v38 = vld [vmem:[#allocation6 + $0x270] sm:$0xff] }
 0x132   : > { %1114 = vmatpush.msrb.mxu1 %v702_v42  ;;  %1028 = vmatpush.msra.mxu2 %v565_v43  ;;  %v2206_v11 = vld [vmem:[#allocation6 + $0x6b8] sm:$0xff]  ;;  %v719_v39 = vld [vmem:[#allocation6 + $0x670] sm:$0xff] }
 0x133   : > { %1057 = vmatpush.msra.mxu3 %v693_v44  ;;  %1086 = vmatpush.msrb.mxu0 %v566_v1  ;;  %v2212_v18 = vld [vmem:[#allocation6 + $0x278] sm:$0xff]  ;;  %v583_v43 = vld [vmem:[#allocation6 + $0x230] sm:$0xff] }
 0x134   : > { %1115 = vmatpush.msrb.mxu1 %v694_v34  ;;  %1029 = vmatpush.msra.mxu2 %v557_v40  ;;  %v2214_v42 = vld [vmem:[#allocation6 + $0x678] sm:$0xff]  ;;  %v711_v44 = vld [vmem:[#allocation6 + $0x630] sm:$0xff] }
 0x135   : > { %1058 = vmatpush.msra.mxu3 %v685_v45  ;;  %1087 = vmatpush.msrb.mxu0 %v558_v46  ;;  %v2220_v1 = vld [vmem:[#allocation6 + $0x238] sm:$0xff]  ;;  %v575_v40 = vld [vmem:[#allocation6 + $0x1f0] sm:$0xff] }
 0x136   : > { %919 = vmatmul.f32.vlgmr.msrb.gmra.mxu2 %v2089_v21  ;;  %977 = vmatmul.f32.vlgmr.msra.gmra.mxu0 %v2089_v21  ;;  %v2222_v34 = vld [vmem:[#allocation6 + $0x638] sm:$0xff]  ;;  %v703_v45 = vld [vmem:[#allocation6 + $0x5f0] sm:$0xff] }
 0x137   : > { %1116 = vmatpush.msrb.mxu1 %v686_v47  ;;  %1030 = vmatpush.msra.mxu2 %v549_v8  ;;  %v2226_v46 = vld [vmem:[#allocation6 + $0x1f8] sm:$0xff]  ;;  %v567_v8 = vld [vmem:[#allocation6 + $0x1b0] sm:$0xff] }
 0x138   : > { %948 = vmatmul.f32.vlgmr.msrb.gmra.mxu3 %v2099_v3  ;;  %1006 = vmatmul.f32.vlgmr.msra.gmra.mxu1 %v2099_v3  ;;  %v2228_v47 = vld [vmem:[#allocation6 + $0x5f8] sm:$0xff] }
 0x139   : > { %1059 = vmatpush.msra.mxu3 %v677_v35  ;;  %1088 = vmatpush.msrb.mxu0 %v550_v48  ;;  %v695_v35 = vld [vmem:[#allocation6 + $0x5b0] sm:$0xff]  ;;  %v2234_v48 = vld [vmem:[#allocation6 + $0x1b8] sm:$0xff] }
 0x13a   : > { %1117 = vmatpush.msrb.mxu1 %v678_v49  ;;  %1031 = vmatpush.msra.mxu2 %v541_v50  ;;  %v2236_v49 = vld [vmem:[#allocation6 + $0x5b8] sm:$0xff]  ;;  %v559_v50 = vld [vmem:[#allocation6 + $0x170] sm:$0xff] }
 0x13b   : > { %1060 = vmatpush.msra.mxu3 %v669_v51  ;;  %1089 = vmatpush.msrb.mxu0 %v542_v52  ;;  %v687_v51 = vld [vmem:[#allocation6 + $0x570] sm:$0xff]  ;;  %v2242_v52 = vld [vmem:[#allocation6 + $0x178] sm:$0xff] }
 0x13c   : > { %1118 = vmatpush.msrb.mxu1 %v670_v53  ;;  %1032 = vmatpush.msra.mxu2 %v533_v17  ;;  %v2244_v53 = vld [vmem:[#allocation6 + $0x578] sm:$0xff]  ;;  %v551_v17 = vld [vmem:[#allocation6 + $0x130] sm:$0xff] }
 0x13d   : > { %1061 = vmatpush.msra.mxu3 %v661_v54  ;;  %1090 = vmatpush.msrb.mxu0 %v534_v55  ;;  %v679_v54 = vld [vmem:[#allocation6 + $0x530] sm:$0xff]  ;;  %v2248_v55 = vld [vmem:[#allocation6 + $0x138] sm:$0xff] }
 0x13e   : > { %922 = vmatmul.f32.gmra.mxu2 %v2106_v41  ;;  %980 = vmatmul.f32.gmra.mxu0 %v2106_v41 }
 0x13f   : > { %1119 = vmatpush.msrb.mxu1 %v662_v56  ;;  %1033 = vmatpush.msra.mxu2 %v525_v57  ;;  %v2250_v56 = vld [vmem:[#allocation6 + $0x538] sm:$0xff]  ;;  %v543_v57 = vld [vmem:[#allocation6 + $0xf0] sm:$0xff] }
 0x140   : > { %951 = vmatmul.f32.gmra.mxu3 %v2117_v2  ;;  %1009 = vmatmul.f32.gmra.mxu1 %v2117_v2 }
 0x141   : > { %1062 = vmatpush.msra.mxu3 %v653_v59  ;;  %1091 = vmatpush.msrb.mxu0 %v526_v60  ;;  %v671_v59 = vld [vmem:[#allocation6 + $0x4f0] sm:$0xff]  ;;  %v2256_v60 = vld [vmem:[#allocation6 + $0xf8] sm:$0xff] }
 0x142   : > { %1120 = vmatpush.msrb.mxu1 %v654_v61  ;;  %1034 = vmatpush.msra.mxu2 %v517_v62  ;;  %v2258_v61 = vld [vmem:[#allocation6 + $0x4f8] sm:$0xff]  ;;  %v535_v62 = vld [vmem:[#allocation6 + $0xb0] sm:$0xff] }
 0x143   : > { %1063 = vmatpush.msra.mxu3 %v645_v63  ;;  %1092 = vmatpush.msrb.mxu0 %v518_v5  ;;  %v663_v63 = vld [vmem:[#allocation6 + $0x4b0] sm:$0xff]  ;;  %v2264_v5 = vld [vmem:[#allocation6 + $0xb8] sm:$0xff] }
 0x144   : > { %1121 = vmatpush.msrb.mxu1 %v646_v6  ;;  %1135 = vmatpush.msrb.mxu2 %v639_v10  ;;  %v2266_v6 = vld [vmem:[#allocation6 + $0x4b8] sm:$0xff]  ;;  %v527_v10 = vld [vmem:[#allocation6 + $0x70] sm:$0xff] }
 0x145   : > { %1164 = vmatpush.msrb.mxu3 %v767_v13  ;;  %1193 = vmatpush.msra.mxu0 %v2168_v14  ;;  %v655_v13 = vld [vmem:[#allocation6 + $0x470] sm:$0xff] }
 0x146   : > { %925 = vmatmul.f32.gmra.mxu2 %v2134_v4  ;;  %983 = vmatmul.f32.gmra.mxu0 %v2134_v4 }
 0x147   : > { %1222 = vmatpush.msra.mxu1 %v2170_v15  ;;  %1136 = vmatpush.msrb.mxu2 %v631_v58  ;;  %v528_v58 = vld [vmem:[#allocation6 + $0x78] sm:$0xff] }
 0x148   : > { %954 = vmatmul.f32.gmra.mxu3 %v2144_v20  ;;  %1012 = vmatmul.f32.gmra.mxu1 %v2144_v20 }
 0x149   : > { %1165 = vmatpush.msrb.mxu3 %v759_v0  ;;  %1194 = vmatpush.msra.mxu0 %v2176_v16  ;;  %v656_v0 = vld [vmem:[#allocation6 + $0x478] sm:$0xff] }
 0x14a   : > { %1223 = vmatpush.msra.mxu1 %v2178_v19  ;;  %1137 = vmatpush.msrb.mxu2 %v623_v22  ;;  %v519_v22 = vld [vmem:[#allocation6 + $0x30] sm:$0xff] }
 0x14b   : > { %1166 = vmatpush.msrb.mxu3 %v751_v23  ;;  %1195 = vmatpush.msra.mxu0 %v2182_v24  ;;  %v647_v23 = vld [vmem:[#allocation6 + $0x430] sm:$0xff] }
 0x14c   : > { %1224 = vmatpush.msra.mxu1 %v2184_v25  ;;  %1138 = vmatpush.msrb.mxu2 %v615_v26  ;;  %v520_v26 = vld [vmem:[#allocation6 + $0x38] sm:$0xff] }
 0x14d   : > { %1167 = vmatpush.msrb.mxu3 %v743_v9  ;;  %1196 = vmatpush.msra.mxu0 %v2190_v12  ;;  %v648_v9 = vld [vmem:[#allocation6 + $0x438] sm:$0xff] }
 0x14e   : > { %928 = vmatmul.f32.gmra.mxu2 %v2149_v27  ;;  %986 = vmatmul.f32.gmra.mxu0 %v2149_v27 }
 0x14f   : > { %1225 = vmatpush.msra.mxu1 %v2192_v28  ;;  %1139 = vmatpush.msrb.mxu2 %v607_v29 }
 0x150   : > { %957 = vmatmul.f32.gmra.mxu3 %v2154_v33  ;;  %1015 = vmatmul.f32.gmra.mxu1 %v2154_v33 }
 0x151   : > { %1168 = vmatpush.msrb.mxu3 %v735_v30  ;;  %1197 = vmatpush.msra.mxu0 %v2198_v31 }
 0x152   : > { %1226 = vmatpush.msra.mxu1 %v2200_v32  ;;  %1140 = vmatpush.msrb.mxu2 %v599_v7 }
 0x153   : > { %1169 = vmatpush.msrb.mxu3 %v727_v36  ;;  %1198 = vmatpush.msra.mxu0 %v2204_v37 }
 0x154   : > { %1227 = vmatpush.msra.mxu1 %v2206_v11  ;;  %1141 = vmatpush.msrb.mxu2 %v591_v38 }
 0x155   : > { %1170 = vmatpush.msrb.mxu3 %v719_v39  ;;  %1199 = vmatpush.msra.mxu0 %v2212_v18 }
 0x156   : > { %1035 = vmatmul.f32.vlgmr.msra.gmra.mxu2 %v2089_v21  ;;  %1093 = vmatmul.f32.vlgmr.msrb.gmra.mxu0 %v2089_v21 }
 0x157   : > { %1228 = vmatpush.msra.mxu1 %v2214_v42  ;;  %1142 = vmatpush.msrb.mxu2 %v583_v43 }
 0x158   : > { %1064 = vmatmul.f32.vlgmr.msra.gmra.mxu3 %v2099_v3  ;;  %1122 = vmatmul.f32.vlgmr.msrb.gmra.mxu1 %v2099_v3 }
 0x159   : > { %1171 = vmatpush.msrb.mxu3 %v711_v44  ;;  %1200 = vmatpush.msra.mxu0 %v2220_v1 }
 0x15a   : > { %1229 = vmatpush.msra.mxu1 %v2222_v34  ;;  %1143 = vmatpush.msrb.mxu2 %v575_v40 }
 0x15b   : > { %1172 = vmatpush.msrb.mxu3 %v703_v45  ;;  %1201 = vmatpush.msra.mxu0 %v2226_v46 }
 0x15c   : > { %1230 = vmatpush.msra.mxu1 %v2228_v47  ;;  %1144 = vmatpush.msrb.mxu2 %v567_v8 }
 0x15d   : > { %1173 = vmatpush.msrb.mxu3 %v695_v35  ;;  %1202 = vmatpush.msra.mxu0 %v2234_v48 }
 0x15e   : > { %1038 = vmatmul.f32.gmra.mxu2 %v2106_v41  ;;  %1096 = vmatmul.f32.gmra.mxu0 %v2106_v41 }
 0x15f   : > { %1231 = vmatpush.msra.mxu1 %v2236_v49  ;;  %1145 = vmatpush.msrb.mxu2 %v559_v50 }
 0x160   : > { %1067 = vmatmul.f32.gmra.mxu3 %v2117_v2  ;;  %1125 = vmatmul.f32.gmra.mxu1 %v2117_v2 }
 0x161   : > { %1174 = vmatpush.msrb.mxu3 %v687_v51  ;;  %1203 = vmatpush.msra.mxu0 %v2242_v52 }
 0x162   : > { %1232 = vmatpush.msra.mxu1 %v2244_v53  ;;  %1146 = vmatpush.msrb.mxu2 %v551_v17 }
 0x163   : > { %1175 = vmatpush.msrb.mxu3 %v679_v54  ;;  %1204 = vmatpush.msra.mxu0 %v2248_v55 }
 0x164   : > { %1233 = vmatpush.msra.mxu1 %v2250_v56  ;;  %1147 = vmatpush.msrb.mxu2 %v543_v57 }
 0x165   : > { %1176 = vmatpush.msrb.mxu3 %v671_v59  ;;  %1205 = vmatpush.msra.mxu0 %v2256_v60 }
 0x166   : > { %1041 = vmatmul.f32.gmra.mxu2 %v2134_v4  ;;  %1099 = vmatmul.f32.gmra.mxu0 %v2134_v4 }
 0x167   : > { %1234 = vmatpush.msra.mxu1 %v2258_v61  ;;  %1148 = vmatpush.msrb.mxu2 %v535_v62 }
 0x168   : > { %1070 = vmatmul.f32.gmra.mxu3 %v2144_v20  ;;  %1128 = vmatmul.f32.gmra.mxu1 %v2144_v20 }
 0x169   : > { %1177 = vmatpush.msrb.mxu3 %v663_v63  ;;  %1206 = vmatpush.msra.mxu0 %v2264_v5 }
 0x16a   : > { %1235 = vmatpush.msra.mxu1 %v2266_v6  ;;  %1149 = vmatpush.msrb.mxu2 %v527_v10 }
 0x16b   : > { %1178 = vmatpush.msrb.mxu3 %v655_v13  ;;  %1207 = vmatpush.msra.mxu0 %v528_v58 }
 0x16c   : > { %1236 = vmatpush.msra.mxu1 %v656_v0  ;;  %1150 = vmatpush.msrb.mxu2 %v519_v22 }
 0x16d   : > { %1179 = vmatpush.msrb.mxu3 %v647_v23  ;;  %1208 = vmatpush.msra.mxu0 %v520_v26 }
 0x16e   : > { %1044 = vmatmul.f32.gmra.mxu2 %v2149_v27  ;;  %1102 = vmatmul.f32.gmra.mxu0 %v2149_v27 }
 0x16f   : > { %1237 = vmatpush.msra.mxu1 %v648_v9  ;;  %1502 = vmatpush.msra.mxu2 %v2168_v14 }
 0x170   : > { %1073 = vmatmul.f32.gmra.mxu3 %v2154_v33  ;;  %1131 = vmatmul.f32.gmra.mxu1 %v2154_v33 }
 0x171   : > { %1518 = vmatpush.msra.mxu3 %v2170_v15  ;;  %1503 = vmatpush.msra.mxu2 %v2176_v16 }
 0x173   : > { %1519 = vmatpush.msra.mxu3 %v2178_v19  ;;  %1504 = vmatpush.msra.mxu2 %v2182_v24 }
 0x175   : > { %1520 = vmatpush.msra.mxu3 %v2184_v25  ;;  %1505 = vmatpush.msra.mxu2 %v2190_v12 }
 0x176   : > { %1151 = vmatmul.f32.vlgmr.msrb.gmra.mxu2 %v2089_v21  ;;  %1209 = vmatmul.f32.vlgmr.msra.gmra.mxu0 %v2089_v21  ;;  %v2310_v21 = vld [vmem:[#allocation7] sm:$0xff] }
 0x177   : > { %1521 = vmatpush.msra.mxu3 %v2192_v28  ;;  %1506 = vmatpush.msra.mxu2 %v2198_v31  ;;  %v771_v15 = vperm.slane %v2310_v21, 0 }
 0x178   : > { %1180 = vmatmul.f32.vlgmr.msrb.gmra.mxu3 %v2099_v3  ;;  %1238 = vmatmul.f32.vlgmr.msra.gmra.mxu1 %v2099_v3  ;;  %v772_v3 = vperm.slane %v2310_v21, 1 }
 0x179   : > { %1522 = vmatpush.msra.mxu3 %v2200_v32  ;;  %1507 = vmatpush.msra.mxu2 %v2204_v37 }
 0x17b   : > { %1523 = vmatpush.msra.mxu3 %v2206_v11  ;;  %1508 = vmatpush.msra.mxu2 %v2212_v18 }
 0x17d   : > { %1524 = vmatpush.msra.mxu3 %v2214_v42  ;;  %1509 = vmatpush.msra.mxu2 %v2220_v1 }
 0x17e   : > { %1154 = vmatmul.f32.gmra.mxu2 %v2106_v41  ;;  %1212 = vmatmul.f32.gmra.mxu0 %v2106_v41 }
 0x17f   : > { %1525 = vmatpush.msra.mxu3 %v2222_v34  ;;  %1510 = vmatpush.msra.mxu2 %v2226_v46  ;;  %v774_v34 = vperm.slane %v2310_v21, 3 }
 0x180   : > { %1183 = vmatmul.f32.gmra.mxu3 %v2117_v2  ;;  %1241 = vmatmul.f32.gmra.mxu1 %v2117_v2 }
 0x181   : > { %1526 = vmatpush.msra.mxu3 %v2228_v47  ;;  %1511 = vmatpush.msra.mxu2 %v2234_v48  ;;  %v773_v48 = vperm.slane %v2310_v21, 2 }
 0x183   : > { %1527 = vmatpush.msra.mxu3 %v2236_v49  ;;  %1512 = vmatpush.msra.mxu2 %v2242_v52 }
 0x185   : > { %1528 = vmatpush.msra.mxu3 %v2244_v53  ;;  %1513 = vmatpush.msra.mxu2 %v2248_v55 }
 0x186   : > { %1157 = vmatmul.f32.gmra.mxu2 %v2134_v4 }
 0x187   : > { %1529 = vmatpush.msra.mxu3 %v2250_v56  ;;  %1514 = vmatpush.msra.mxu2 %v2256_v60 }
 0x188   : > { %1186 = vmatmul.f32.gmra.mxu3 %v2144_v20 }
 0x189   : > { %1530 = vmatpush.msra.mxu3 %v2258_v61  ;;  %1515 = vmatpush.msra.mxu2 %v2264_v5 }
 0x18b   : > { %1531 = vmatpush.msra.mxu3 %v2266_v6  ;;  %1516 = vmatpush.msra.mxu2 %v528_v58 }
 0x18d   : > { %1532 = vmatpush.msra.mxu3 %v656_v0  ;;  %1517 = vmatpush.msra.mxu2 %v520_v26 }
 0x18e   : > { %1160 = vmatmul.f32.gmra.mxu2 %v2149_v27 }
 0x18f   : > { %1533 = vmatpush.msra.mxu3 %v648_v9 }
 0x190   : > { %1189 = vmatmul.f32.gmra.mxu3 %v2154_v33 }
 0x193   : > { %v862_v41 = vpop.f32.mrf.mxu0 }
 0x194   : > { %v863_v2 = vadd.f32 %v862_v41, %v772_v3  ;;  %v776_v41 = vperm.slane %v2310_v21, 5 }
 0x195   : > { %v891_v14 = vpop.f32.mrf.mxu1 }
 0x196   : > { %1215 = vmatmul.f32.vlgmr.msra.gmra.mxu2 %v2134_v4  ;;  %v892_v16 = vadd.f32 %v891_v14, %v863_v2 }
 0x198   : > { %1252 = vst [vmem:[%s2320_s20 + $0x8] sm:$0xff] %v892_v16  ;;  %1244 = vmatmul.f32.vlgmr.msra.gmra.mxu3 %v2144_v20 }
 0x199   : > { %v804_v19 = vpop.f32.mrf.mxu2 }
 0x19a   : > { %v805_v24 = vadd.f32 %v804_v19, %v771_v15 }
 0x19b   : > { %v865_v25 = vpop.f32.mrf.mxu0  ;;  %v833_v12 = vpop.f32.mrf.mxu3 }
 0x19c   : > { %v866_v28 = vadd.f32 %v865_v25, %v772_v3  ;;  %v834_v29 = vadd.f32 %v833_v12, %v805_v24  ;;  %v775_v25 = vperm.slane %v2310_v21, 4 }
 0x19d   : > { %v894_v30 = vpop.f32.mrf.mxu1 }
 0x19e   : > { %1218 = vmatmul.f32.gmra.mxu2 %v2149_v27  ;;  %1251 = vst [vmem:[%s2320_s20] sm:$0xff] %v834_v29  ;;  %v895_v4 = vadd.f32 %v894_v30, %v866_v28 }
 0x1a0   : > { %1260 = vst [vmem:[%s2320_s20 + $0x48] sm:$0x3] %v895_v4  ;;  %1247 = vmatmul.f32.gmra.mxu3 %v2154_v33 }
 0x1a1   : > { %v807_v31 = vpop.f32.mrf.mxu2 }
 0x1a2   : > { %v808_v32 = vadd.f32 %v807_v31, %v771_v15 }
 0x1a3   : > { %v868_v7 = vpop.f32.mrf.mxu0  ;;  %v836_v20 = vpop.f32.mrf.mxu3 }
 0x1a4   : > { %v869_v36 = vadd.f32 %v868_v7, %v772_v3  ;;  %v837_v37 = vadd.f32 %v836_v20, %v808_v32 }
 0x1a5   : > { %v897_v11 = vpop.f32.mrf.mxu1 }
 0x1a6   : > { %1259 = vst [vmem:[%s2320_s20 + $0x40] sm:$0x3] %v837_v37  ;;  %v898_v38 = vadd.f32 %v897_v11, %v869_v36 }
 0x1a8   : > { %1480 = vst [vmem:[%s2320_s20 + $0x88] sm:$0xff] %v898_v38 }
 0x1a9   : > { %v810_v39 = vpop.f32.mrf.mxu2 }
 0x1aa   : > { %v811_v18 = vadd.f32 %v810_v39, %v771_v15 }
 0x1ab   : > { %v871_v27 = vpop.f32.mrf.mxu0  ;;  %v839_v43 = vpop.f32.mrf.mxu3 }
 0x1ac   : > { %v872_v42 = vadd.f32 %v871_v27, %v772_v3  ;;  %v840_v44 = vadd.f32 %v839_v43, %v811_v18 }
 0x1ad   : > { %v900_v1 = vpop.f32.mrf.mxu1 }
 0x1ae   : > { %1479 = vst [vmem:[%s2320_s20 + $0x80] sm:$0xff] %v840_v44  ;;  %v901_v33 = vadd.f32 %v900_v1, %v872_v42 }
 0x1b0   : > { %1488 = vst [vmem:[%s2320_s20 + $0xc8] sm:$0x3] %v901_v33 }
 0x1b1   : > { %v813_v40 = vpop.f32.mrf.mxu2 }
 0x1b2   : > { %v814_v45 = vadd.f32 %v813_v40, %v771_v15 }
 0x1b3   : > { %v978_v46 = vpop.f32.mrf.mxu0  ;;  %v842_v8 = vpop.f32.mrf.mxu3 }
 0x1b4   : > { %v979_v47 = vadd.f32 %v978_v46, %v774_v34  ;;  %v843_v35 = vadd.f32 %v842_v8, %v814_v45  ;;  %v778_v8 = vperm.slane %v2310_v21, 7 }
 0x1b5   : > { %v1007_v49 = vpop.f32.mrf.mxu1 }
 0x1b6   : > { %1487 = vst [vmem:[%s2320_s20 + $0xc0] sm:$0x3] %v843_v35  ;;  %v1008_v50 = vadd.f32 %v1007_v49, %v979_v47 }
 0x1b8   : > { %1254 = vst [vmem:[%s2320_s20 + $0x18] sm:$0xff] %v1008_v50 }
 0x1b9   : > { %v920_v51 = vpop.f32.mrf.mxu2 }
 0x1ba   : > { %v921_v52 = vadd.f32 %v920_v51, %v773_v48 }
 0x1bb   : > { %v981_v53 = vpop.f32.mrf.mxu0  ;;  %v949_v54 = vpop.f32.mrf.mxu3 }
 0x1bc   : > { %v982_v17 = vadd.f32 %v981_v53, %v774_v34  ;;  %v950_v55 = vadd.f32 %v949_v54, %v921_v52  ;;  %v777_v53 = vperm.slane %v2310_v21, 6 }
 0x1bd   : > { %v1010_v56 = vpop.f32.mrf.mxu1 }
 0x1be   : > { %1253 = vst [vmem:[%s2320_s20 + $0x10] sm:$0xff] %v950_v55  ;;  %v1011_v57 = vadd.f32 %v1010_v56, %v982_v17 }
 0x1c0   : > { %1262 = vst [vmem:[%s2320_s20 + $0x58] sm:$0x3] %v1011_v57 }
 0x1c1   : > { %v923_v59 = vpop.f32.mrf.mxu2 }
 0x1c2   : > { %v924_v60 = vadd.f32 %v923_v59, %v773_v48 }
 0x1c3   : > { %v984_v61 = vpop.f32.mrf.mxu0  ;;  %v952_v63 = vpop.f32.mrf.mxu3 }
 0x1c4   : > { %v985_v62 = vadd.f32 %v984_v61, %v774_v34  ;;  %v953_v5 = vadd.f32 %v952_v63, %v924_v60 }
 0x1c5   : > { %v1013_v6 = vpop.f32.mrf.mxu1 }
 0x1c6   : > { %1261 = vst [vmem:[%s2320_s20 + $0x50] sm:$0x3] %v953_v5  ;;  %v1014_v10 = vadd.f32 %v1013_v6, %v985_v62 }
 0x1c8   : > { %1482 = vst [vmem:[%s2320_s20 + $0x98] sm:$0xff] %v1014_v10 }
 0x1c9   : > { %v926_v13 = vpop.f32.mrf.mxu2 }
 0x1ca   : > { %v927_v58 = vadd.f32 %v926_v13, %v773_v48 }
 0x1cb   : > { %v987_v0 = vpop.f32.mrf.mxu0  ;;  %v955_v23 = vpop.f32.mrf.mxu3 }
 0x1cc   : > { %v988_v22 = vadd.f32 %v987_v0, %v774_v34  ;;  %v956_v26 = vadd.f32 %v955_v23, %v927_v58 }
 0x1cd   : > { %v1016_v9 = vpop.f32.mrf.mxu1 }
 0x1ce   : > { %1481 = vst [vmem:[%s2320_s20 + $0x90] sm:$0xff] %v956_v26  ;;  %v1017_v3 = vadd.f32 %v1016_v9, %v988_v22 }
 0x1d0   : > { %1490 = vst [vmem:[%s2320_s20 + $0xd8] sm:$0x3] %v1017_v3 }
 0x1d1   : > { %v929_v2 = vpop.f32.mrf.mxu2 }
 0x1d2   : > { %v930_v14 = vadd.f32 %v929_v2, %v773_v48 }
 0x1d3   : > { %v1094_v15 = vpop.f32.mrf.mxu0  ;;  %v958_v19 = vpop.f32.mrf.mxu3 }
 0x1d4   : > { %v1095_v16 = vadd.f32 %v1094_v15, %v776_v41  ;;  %v959_v24 = vadd.f32 %v958_v19, %v930_v14 }
 0x1d5   : > { %v1123_v12 = vpop.f32.mrf.mxu1 }
 0x1d6   : > { %1489 = vst [vmem:[%s2320_s20 + $0xd0] sm:$0x3] %v959_v24  ;;  %v1124_v28 = vadd.f32 %v1123_v12, %v1095_v16  ;;  %v1306_v12 = vld [vmem:[%s2320_s20] sm:$0xff] (%p1902_p12) }
 0x1d7   : > { %1307 = vst [vmem:[%s2371_s9] sm:$0xff] (%p1902_p12), %v1306_v12 }
 0x1d8   : > { %1256 = vst [vmem:[%s2320_s20 + $0x28] sm:$0xff] %v1124_v28  ;;  %v1308_v28 = vld [vmem:[%s2320_s20 + $0x8] sm:$0xff] (%p1902_p12) }
 0x1d9   : > { %v1036_v29 = vpop.f32.mrf.mxu2  ;;  %1309 = vst [vmem:[%s2371_s9 + $0x8] sm:$0xff] (%p1902_p12), %v1308_v28 }
 0x1da   : > { %v1037_v30 = vadd.f32 %v1036_v29, %v775_v25  ;;  %v1310_v29 = vld [vmem:[%s2320_s20 + $0x10] sm:$0xff] (%p1902_p12) }
 0x1db   : > { %v1097_v4 = vpop.f32.mrf.mxu0  ;;  %v1065_v32 = vpop.f32.mrf.mxu3  ;;  %1311 = vst [vmem:[%s2371_s9 + $0x10] sm:$0xff] (%p1902_p12), %v1310_v29 }
 0x1dc   : > { %v1098_v31 = vadd.f32 %v1097_v4, %v776_v41  ;;  %v1066_v7 = vadd.f32 %v1065_v32, %v1037_v30  ;;  %v1312_v30 = vld [vmem:[%s2320_s20 + $0x18] sm:$0xff] (%p1902_p12) }
 0x1dd   : > { %v1126_v20 = vpop.f32.mrf.mxu1  ;;  %1313 = vst [vmem:[%s2371_s9 + $0x18] sm:$0xff] (%p1902_p12), %v1312_v30 }
 0x1de   : > { %1255 = vst [vmem:[%s2320_s20 + $0x20] sm:$0xff] %v1066_v7  ;;  %v1127_v36 = vadd.f32 %v1126_v20, %v1098_v31  ;;  %v1322_v20 = vld [vmem:[%s2320_s20 + $0x40] sm:$0xff] (%p1902_p12) }
 0x1df   : > { %v1316_v31 = vld [vmem:[%s2320_s20 + $0x28] sm:$0xff] (%p1902_p12)  ;;  %1323 = vst [vmem:[%s2371_s9 + $0x40] sm:$0xff] (%p1902_p12), %v1322_v20 }
 0x1e0   : > { %1264 = vst [vmem:[%s2320_s20 + $0x68] sm:$0x3] %v1127_v36  ;;  %v1324_v36 = vld [vmem:[%s2320_s20 + $0x48] sm:$0xff] (%p1902_p12) }
 0x1e1   : > { %v1039_v37 = vpop.f32.mrf.mxu2  ;;  %1317 = vst [vmem:[%s2371_s9 + $0x28] sm:$0xff] (%p1902_p12), %v1316_v31 }
 0x1e2   : > { %v1040_v11 = vadd.f32 %v1039_v37, %v775_v25  ;;  %v1326_v37 = vld [vmem:[%s2320_s20 + $0x50] sm:$0xff] (%p1902_p12)  ;;  %1325 = vst [vmem:[%s2371_s9 + $0x48] sm:$0xff] (%p1902_p12), %v1324_v36 }
 0x1e3   : > { %v1100_v38 = vpop.f32.mrf.mxu0  ;;  %v1068_v18 = vpop.f32.mrf.mxu3  ;;  %1327 = vst [vmem:[%s2371_s9 + $0x50] sm:$0xff] (%p1902_p12), %v1326_v37 }
 0x1e4   : > { %v1101_v39 = vadd.f32 %v1100_v38, %v776_v41  ;;  %v1069_v27 = vadd.f32 %v1068_v18, %v1040_v11  ;;  %v1328_v11 = vld [vmem:[%s2320_s20 + $0x58] sm:$0xff] (%p1902_p12) }
 0x1e5   : > { %v1129_v42 = vpop.f32.mrf.mxu1  ;;  %v1314_v4 = vld [vmem:[%s2320_s20 + $0x20] sm:$0xff] (%p1902_p12)  ;;  %1329 = vst [vmem:[%s2371_s9 + $0x58] sm:$0xff] (%p1902_p12), %v1328_v11 }
 0x1e6   : > { %1263 = vst [vmem:[%s2320_s20 + $0x60] sm:$0x3] %v1069_v27  ;;  %v1130_v43 = vadd.f32 %v1129_v42, %v1101_v39  ;;  %v1338_v42 = vld [vmem:[%s2320_s20 + $0x80] sm:$0xff] (%p1902_p12) }
 0x1e7   : > { %1315 = vst [vmem:[%s2371_s9 + $0x20] sm:$0xff] (%p1902_p12), %v1314_v4  ;;  %v1332_v39 = vld [vmem:[%s2320_s20 + $0x68] sm:$0xff] (%p1902_p12) }
 0x1e8   : > { %1484 = vst [vmem:[%s2320_s20 + $0xa8] sm:$0xff] %v1130_v43  ;;  %v1340_v43 = vld [vmem:[%s2320_s20 + $0x88] sm:$0xff] (%p1902_p12) }
 0x1e9   : > { %v1042_v44 = vpop.f32.mrf.mxu2  ;;  %1333 = vst [vmem:[%s2371_s9 + $0x68] sm:$0xff] (%p1902_p12), %v1332_v39 }
 0x1ea   : > { %v1043_v1 = vadd.f32 %v1042_v44, %v775_v25  ;;  %v1342_v44 = vld [vmem:[%s2320_s20 + $0x90] sm:$0xff] (%p1902_p12)  ;;  %1339 = vst [vmem:[%s2371_s9 + $0x100] sm:$0xff] (%p1902_p12), %v1338_v42 }
 0x1eb   : > { %v1103_v33 = vpop.f32.mrf.mxu0  ;;  %v1071_v40 = vpop.f32.mrf.mxu3  ;;  %1341 = vst [vmem:[%s2371_s9 + $0x108] sm:$0xff] (%p1902_p12), %v1340_v43 }
 0x1ec   : > { %v1104_v34 = vadd.f32 %v1103_v33, %v776_v41  ;;  %v1072_v45 = vadd.f32 %v1071_v40, %v1043_v1  ;;  %v1344_v1 = vld [vmem:[%s2320_s20 + $0x98] sm:$0xff] (%p1902_p12)  ;;  %1343 = vst [vmem:[%s2371_s9 + $0x110] sm:$0xff] (%p1902_p12), %v1342_v44 }
 0x1ed   : > { %v1132_v46 = vpop.f32.mrf.mxu1  ;;  %v1330_v38 = vld [vmem:[%s2320_s20 + $0x60] sm:$0xff] (%p1902_p12)  ;;  %1345 = vst [vmem:[%s2371_s9 + $0x118] sm:$0xff] (%p1902_p12), %v1344_v1 }
 0x1ee   : > { %1483 = vst [vmem:[%s2320_s20 + $0xa0] sm:$0xff] %v1072_v45  ;;  %v1133_v47 = vadd.f32 %v1132_v46, %v1104_v34  ;;  %v1354_v46 = vld [vmem:[%s2320_s20 + $0xc0] sm:$0xff] (%p1902_p12) }
 0x1ef   : > { %1331 = vst [vmem:[%s2371_s9 + $0x60] sm:$0xff] (%p1902_p12), %v1330_v38  ;;  %v1348_v34 = vld [vmem:[%s2320_s20 + $0xa8] sm:$0xff] (%p1902_p12) }
 0x1f0   : > { %1492 = vst [vmem:[%s2320_s20 + $0xe8] sm:$0x3] %v1133_v47  ;;  %v1356_v47 = vld [vmem:[%s2320_s20 + $0xc8] sm:$0xff] (%p1902_p12) }
 0x1f1   : > { %v1045_v35 = vpop.f32.mrf.mxu2  ;;  %1349 = vst [vmem:[%s2371_s9 + $0x128] sm:$0xff] (%p1902_p12), %v1348_v34 }
 0x1f2   : > { %v1046_v48 = vadd.f32 %v1045_v35, %v775_v25  ;;  %1355 = vst [vmem:[%s2371_s9 + $0x140] sm:$0xff] (%p1902_p12), %v1354_v46  ;;  %v1360_v35 = vld [vmem:[%s2320_s20 + $0xd8] sm:$0xff] (%p1902_p12) }
 0x1f3   : > { %v1210_v49 = vpop.f32.mrf.mxu0  ;;  %v1074_v51 = vpop.f32.mrf.mxu3  ;;  %1357 = vst [vmem:[%s2371_s9 + $0x148] sm:$0xff] (%p1902_p12), %v1356_v47 }
 0x1f4   : > { %v1211_v50 = vadd.f32 %v1210_v49, %v778_v8  ;;  %v1075_v52 = vadd.f32 %v1074_v51, %v1046_v48  ;;  %1361 = vst [vmem:[%s2371_s9 + $0x158] sm:$0xff] (%p1902_p12), %v1360_v35 }
 0x1f5   : > { %v1239_v17 = vpop.f32.mrf.mxu1  ;;  %v1346_v33 = vld [vmem:[%s2320_s20 + $0xa0] sm:$0xff] (%p1902_p12) }
 0x1f6   : > { %1491 = vst [vmem:[%s2320_s20 + $0xe0] sm:$0x3] %v1075_v52  ;;  %v1240_v54 = vadd.f32 %v1239_v17, %v1211_v50 }
 0x1f7   : > { %1347 = vst [vmem:[%s2371_s9 + $0x120] sm:$0xff] (%p1902_p12), %v1346_v33  ;;  %v1364_v49 = vld [vmem:[%s2320_s20 + $0xe8] sm:$0xff] (%p1902_p12) }
 0x1f8   : > { %1258 = vst [vmem:[%s2320_s20 + $0x38] sm:$0xff] %v1240_v54 }
 0x1f9   : > { %v1152_v55 = vpop.f32.mrf.mxu2  ;;  %1365 = vst [vmem:[%s2371_s9 + $0x168] sm:$0xff] (%p1902_p12), %v1364_v49 }
 0x1fa   : > { %v1153_v56 = vadd.f32 %v1152_v55, %v777_v53 }
 0x1fb   : > { %v1213_v57 = vpop.f32.mrf.mxu0  ;;  %v1181_v60 = vpop.f32.mrf.mxu3 }
 0x1fc   : > { %v1214_v59 = vadd.f32 %v1213_v57, %v778_v8  ;;  %v1182_v61 = vadd.f32 %v1181_v60, %v1153_v56 }
 0x1fd   : > { %v1242_v62 = vpop.f32.mrf.mxu1  ;;  %v1362_v48 = vld [vmem:[%s2320_s20 + $0xe0] sm:$0xff] (%p1902_p12) }
 0x1fe   : > { %1257 = vst [vmem:[%s2320_s20 + $0x30] sm:$0xff] %v1182_v61  ;;  %v1243_v63 = vadd.f32 %v1242_v62, %v1214_v59 }
 0x1ff   : > { %v1320_v7 = vld [vmem:[%s2320_s20 + $0x38] sm:$0xff] (%p1902_p12)  ;;  %1363 = vst [vmem:[%s2371_s9 + $0x160] sm:$0xff] (%p1902_p12), %v1362_v48 }
 0x200   : > { %1266 = vst [vmem:[%s2320_s20 + $0x78] sm:$0x3] %v1243_v63 }
 0x201   : > { %v1155_v5 = vpop.f32.mrf.mxu2  ;;  %1321 = vst [vmem:[%s2371_s9 + $0x38] sm:$0xff] (%p1902_p12), %v1320_v7 }
 0x202   : > { %v1156_v6 = vadd.f32 %v1155_v5, %v777_v53 }
 0x203   : > { %v1184_v21 = vpop.f32.mrf.mxu3 }
 0x204   : > { %v1185_v10 = vadd.f32 %v1184_v21, %v1156_v6 }
 0x205   : > { %v1318_v32 = vld [vmem:[%s2320_s20 + $0x30] sm:$0xff] (%p1902_p12) }
 0x206   : > { %1265 = vst [vmem:[%s2320_s20 + $0x70] sm:$0x3] %v1185_v10 }
 0x207   : > { %1319 = vst [vmem:[%s2371_s9 + $0x30] sm:$0xff] (%p1902_p12), %v1318_v32  ;;  %v1336_v27 = vld [vmem:[%s2320_s20 + $0x78] sm:$0xff] (%p1902_p12) }
 0x208   : > { %1337 = vst [vmem:[%s2371_s9 + $0x78] sm:$0xff] (%p1902_p12), %v1336_v27 }
 0x209   : > { %v1158_v13 = vpop.f32.mrf.mxu2 }
 0x20a   : > { %v1159_v58 = vadd.f32 %v1158_v13, %v777_v53 }
 0x20b   : > { %v1187_v0 = vpop.f32.mrf.mxu3 }
 0x20c   : > { %v1188_v22 = vadd.f32 %v1187_v0, %v1159_v58 }
 0x20d   : > { %v1334_v18 = vld [vmem:[%s2320_s20 + $0x70] sm:$0xff] (%p1902_p12) }
 0x20e   : > { %1485 = vst [vmem:[%s2320_s20 + $0xb0] sm:$0xff] %v1188_v22 }
 0x20f   : > { %1335 = vst [vmem:[%s2371_s9 + $0x70] sm:$0xff] (%p1902_p12), %v1334_v18 }
 0x211   : > { %v1161_v23 = vpop.f32.mrf.mxu2 }
 0x212   : > { %v1162_v26 = vadd.f32 %v1161_v23, %v777_v53 }
 0x213   : > { %v1190_v9 = vpop.f32.mrf.mxu3 }
 0x214   : > { %v1191_v3 = vadd.f32 %v1190_v9, %v1162_v26 }
 0x215   : > { %v1350_v40 = vld [vmem:[%s2320_s20 + $0xb0] sm:$0xff] (%p1902_p12) }
 0x216   : > { %1493 = vst [vmem:[%s2320_s20 + $0xf0] sm:$0x3] %v1191_v3 }
 0x217   : > { %1351 = vst [vmem:[%s2371_s9 + $0x130] sm:$0xff] (%p1902_p12), %v1350_v40 }
 0x219   : > { %v1216_v41 = vpop.f32.mrf.mxu2 }
 0x21a   : > { %v1217_v2 = vadd.f32 %v1216_v41, %v778_v8 }
 0x21b   : > { %v1245_v14 = vpop.f32.mrf.mxu3 }
 0x21c   : > { %v1246_v15 = vadd.f32 %v1245_v14, %v1217_v2 }
 0x21d   : > { %v1366_v50 = vld [vmem:[%s2320_s20 + $0xf0] sm:$0xff] (%p1902_p12) }
 0x21e   : > { %1486 = vst [vmem:[%s2320_s20 + $0xb8] sm:$0xff] %v1246_v15 }
 0x21f   : > { %1367 = vst [vmem:[%s2371_s9 + $0x170] sm:$0xff] (%p1902_p12), %v1366_v50 }
 0x221   : > { %v1219_v16 = vpop.f32.mrf.mxu2 }
 0x222   : > { %v1220_v19 = vadd.f32 %v1219_v16, %v778_v8  ;;  %1290 = sbr.rel (!%p1902_p12) target bundleno = 559 (0x22f), region = 56  ;;  %v1358_v8 = vld [vmem:[%s2320_s20 + $0xd0] sm:$0xff] (%p1902_p12) }
 0x223   : > { %v1248_v24 = vpop.f32.mrf.mxu3  ;;  %1359 = vst [vmem:[%s2371_s9 + $0x150] sm:$0xff] (%p1902_p12), %v1358_v8 }
 0x224   : > { %v1249_v25 = vadd.f32 %v1248_v24, %v1220_v19 }
 0x225   : > { %v1352_v45 = vld [vmem:[%s2320_s20 + $0xb8] sm:$0xff] (%p1902_p12) }
 0x226   : > { %1494 = vst [vmem:[%s2320_s20 + $0xf8] sm:$0x3] %v1249_v25 }
 0x227   : > { %1353 = vst [vmem:[%s2371_s9 + $0x138] sm:$0xff] %v1352_v45 }
 0x22d   : > { %v1368_v51 = vld [vmem:[%s2320_s20 + $0xf8] sm:$0xff] }
 0x22e   : > { %1369 = vst [vmem:[%s2371_s9 + $0x178] sm:$0xff] %v1368_v51 }
 0x22f PF: > { %p16_p1 = scmp.ge.s32.totalorder %s1892_s22, 4   ;;  %s2462_s15 = smov %s1788_s16 }
 0x230   : > { %s2463_s16 = smov %s1792_s17  ;;  %s2464_s17 = smov %s1908_s26 }
 0x231   : > { %s2465_s18 = smov %s1892_s22  ;;  %18 = sbr.rel (!%p16_p1) target bundleno = 5 (0x5), region = 112 }
 0x236   :  { %1385 = vsyncpa [#allocation3], 1 }
 0x237   :  { %1387 = vsyncpa [#allocation3 + $0x1], 1 }
 0x238   :  { %1388 = vsyncpa [#allocation5], 1 }
 0x239   :  { %1389 = vsyncpa [#allocation8], 1 }

</bundles_post_ra>
